<compile_context>
chip_gen: v7x
topology: tpu7x:2x2x1
jax: 0.10.0
libtpu: 0.0.40
codegen_flags: <defaults>
</compile_context>

<pallas_src>
import jax
import jax.numpy as jnp
import numpy as np
from jax.experimental import pallas as pl
from jax.experimental.pallas import tpu as pltpu


def _round_up(x, m):
    return (x + m - 1) // m * m


def rnn_forward(x, w_ih, w_hh, b_ih, b_hh, w_out, b_out, *, time_chunk=16):
    """x: (T, B, I) float32. Weights follow PyTorch shapes:
       w_ih (4H, I), w_hh (4H, H), b_ih (4H,), b_hh (4H,), w_out (O, H), b_out (O,)."""
    T, B, I = x.shape
    H = w_hh.shape[1]
    O = w_out.shape[0]

    f32 = jnp.float32
    bf16 = jnp.bfloat16

    Bp = _round_up(B, 8)        # sublane alignment (f32 state / output tiles)
    Hp = _round_up(H, 128)      # lane alignment -> tile-aligned gate slices / state
    Op = _round_up(O, 128)      # lane-dense output writeback
    Tc = max(1, min(time_chunk, T))
    Tp = _round_up(T, Tc)
    n_chunks = Tp // Tc
    # v7x megacore: shard the padded batch across the 2 TensorCores when there is
    # enough batch to give each core its own sublane-aligned block. On single-TC
    # v5e/v6e the extra "parallel" axis is just a (cheap) outer loop.
    n_bb = 2 if (Bp >= 16 and Bp % 16 == 0) else 1
    Bb = Bp // n_bb

    # ---- weight prep -------------------------------------------------------
    # Reorder the packed gate axis from PyTorch (i, f, g, o) to (i, f, o, g) so the
    # three sigmoid gates occupy contiguous lanes [0, 3Hp) and tanh the last Hp.
    # Pad each gate block to Hp: padding is zeros, so padded hidden columns stay
    # exactly zero through the recurrence (g=tanh(0)=0 keeps padded c at 0).
    perm = np.array([0, 1, 3, 2])
    w_ih4 = jnp.pad(jnp.asarray(w_ih, f32).reshape(4, H, I)[perm],
                    ((0, 0), (0, Hp - H), (0, 0)))
    wih_t = w_ih4.reshape(4 * Hp, I).T.astype(bf16)                 # (I, 4Hp)  bf16
    w_hh4 = jnp.pad(jnp.asarray(w_hh, f32).reshape(4, H, H)[perm],
                    ((0, 0), (0, Hp - H), (0, Hp - H)))
    whh_t = w_hh4.reshape(4 * Hp, Hp).T.astype(bf16)                # (Hp, 4Hp) bf16
    b4 = jnp.pad((jnp.asarray(b_ih, f32) + jnp.asarray(b_hh, f32)).reshape(4, H)[perm],
                 ((0, 0), (0, Hp - H)))
    b = b4.reshape(1, 4 * Hp)                                       # (1, 4Hp)  f32
    wout_t = jnp.pad(jnp.asarray(w_out, f32),
                     ((0, Op - O), (0, Hp - H))).T.astype(bf16)     # (Hp, Op)  bf16
    bout = jnp.pad(jnp.asarray(b_out, f32), (0, Op - O)).reshape(1, Op)

    # x stays f32 in HBM (keeps the known-good (8,128) DMA layout); it is cast to
    # bf16 in-kernel right before the MXU op.
    xp = jnp.pad(jnp.asarray(x, f32), ((0, Tp - T), (0, Bp - B), (0, 0)))

    needs_time_guard = Tp > T   # padded trailing steps must not touch (h, c) state

    def kernel(x_ref, wih_ref, whh_ref, b_ref, wout_ref, bout_ref, out_ref,
               h_sc, c_sc, gx_sc, hseq_sc):
        # PyTorch init_hidden() -> zeros, at the start of each batch block's sweep.
        @pl.when(pl.program_id(1) == 0)
        def _():
            h_sc[...] = jnp.zeros_like(h_sc)
            c_sc[...] = jnp.zeros_like(c_sc)

        # ---- Batched (non-recurrent) input projection for the whole chunk ----
        # One (Tc*Bb, I) @ (I, 4Hp) bf16 MXU op; result parked in VMEM scratch so
        # it does not pin ~2*Tc vregs across the sequential loop.
        x_chunk = x_ref[...].astype(bf16).reshape(Tc * Bb, I)
        gx = jnp.dot(x_chunk, wih_ref[...],
                     preferred_element_type=f32) + b_ref[...]
        gx_sc[...] = gx.reshape(Tc, Bb, 4 * Hp)

        chunk_base = pl.program_id(1) * Tc

        # ---- Sequential recurrence over the Tc steps of this chunk ------------
        def step(t, carry):
            h, c = carry
            gates = gx_sc[t] + jnp.dot(h.astype(bf16), whh_ref[...],
                                       preferred_element_type=f32)
            # Gate order (i, f, o, g): one sigmoid over the 3*Hp slab, one tanh.
            sig = jax.nn.sigmoid(gates[:, :3 * Hp])
            g_g = jnp.tanh(gates[:, 3 * Hp:])
            i_g = sig[:, 0 * Hp:1 * Hp]
            f_g = sig[:, 1 * Hp:2 * Hp]
            o_g = sig[:, 2 * Hp:3 * Hp]
            c_new = f_g * c + i_g * g_g
            h_new = o_g * jnp.tanh(c_new)
            if needs_time_guard:
                valid = (chunk_base + t) < T
                h_new = jnp.where(valid, h_new, h)
                c_new = jnp.where(valid, c_new, c)
            hseq_sc[t] = h_new
            return (h_new, c_new)

        h_fin, c_fin = jax.lax.fori_loop(0, Tc, step, (h_sc[...], c_sc[...]),
                                         unroll=True)
        h_sc[...] = h_fin
        c_sc[...] = c_fin

        # ---- Batched output head for the whole chunk, lane-dense store --------
        h_all = hseq_sc[...].astype(bf16).reshape(Tc * Bb, Hp)
        y = jnp.dot(h_all, wout_ref[...],
                    preferred_element_type=f32) + bout_ref[...]
        out_ref[...] = y.reshape(Tc, Bb, Op).astype(out_ref.dtype)

    cost = pl.CostEstimate(
        flops=2 * Tp * Bp * (I * 4 * Hp + Hp * 4 * Hp + Hp * Op),
        transcendentals=5 * Tp * Bp * Hp,
        bytes_accessed=(4 * xp.size
                        + 2 * (wih_t.size + whh_t.size + wout_t.size)
                        + 4 * (b.size + bout.size)
                        + 4 * Tp * Bp * Op),
    )

    grid_spec = pltpu.PrefetchScalarGridSpec(
        num_scalar_prefetch=0,
        grid=(n_bb, n_chunks),
        in_specs=[
            pl.BlockSpec((Tc, Bb, I), lambda bb, n: (n, bb, 0)),    # x chunk
            pl.BlockSpec((I, 4 * Hp), lambda bb, n: (0, 0)),        # W_ih^T (resident)
            pl.BlockSpec((Hp, 4 * Hp), lambda bb, n: (0, 0)),       # W_hh^T (resident)
            pl.BlockSpec((1, 4 * Hp), lambda bb, n: (0, 0)),        # fused bias
            pl.BlockSpec((Hp, Op), lambda bb, n: (0, 0)),           # W_out^T
            pl.BlockSpec((1, Op), lambda bb, n: (0, 0)),            # b_out
        ],
        out_specs=pl.BlockSpec((Tc, Bb, Op), lambda bb, n: (n, bb, 0)),
        scratch_shapes=[
            pltpu.VMEM((Bb, Hp), f32),            # h state (persists across chunks)
            pltpu.VMEM((Bb, Hp), f32),            # c state
            pltpu.VMEM((Tc, Bb, 4 * Hp), f32),    # per-chunk input-gate projections
            pltpu.VMEM((Tc, Bb, Hp), f32),        # per-chunk h sequence (for the head)
        ],
    )

    out = pl.pallas_call(
        kernel,
        out_shape=jax.ShapeDtypeStruct((Tp, Bp, Op), f32),
        grid_spec=grid_spec,
        cost_estimate=cost,
        compiler_params=pltpu.CompilerParams(
            dimension_semantics=("parallel", "arbitrary")),   # batch || , time sequential
    )(xp, wih_t, whh_t, b, wout_t, bout)

    return out[:T, :B, :O]


def rnn_forward_ref(x, w_ih, w_hh, b_ih, b_hh, w_out, b_out):
    """Pure-JAX reference (lax.scan) matching PyTorch nn.LSTM + Linear semantics (f32)."""
    H = w_hh.shape[1]
    b = b_ih + b_hh

    def step(carry, x_t):
        h, c = carry
        gates = x_t @ w_ih.T + h @ w_hh.T + b
        i = jax.nn.sigmoid(gates[:, 0 * H:1 * H])
        f = jax.nn.sigmoid(gates[:, 1 * H:2 * H])
        g = jnp.tanh(gates[:, 2 * H:3 * H])
        o = jax.nn.sigmoid(gates[:, 3 * H:4 * H])
        c_new = f * c + i * g
        h_new = o * jnp.tanh(c_new)
        return (h_new, c_new), h_new

    B = x.shape[1]
    h0 = jnp.zeros((B, H), jnp.float32)
    c0 = jnp.zeros((B, H), jnp.float32)
    _, hs = jax.lax.scan(step, (h0, c0), x)
    return hs @ w_out.T + b_out


if __name__ == "__main__":
    # Small shapes consistent with the module: seq=8, batch=4, input=16, hidden=32, output=16
    T, B, I, H, O = 8, 4, 16, 32, 16

    key = jax.random.PRNGKey(0)
    ks = jax.random.split(key, 7)
    scale = 1.0 / np.sqrt(H)  # PyTorch LSTM/Linear default init range
    x = jax.random.normal(ks[0], (T, B, I), jnp.float32)
    w_ih = jax.random.uniform(ks[1], (4 * H, I), jnp.float32, -scale, scale)
    w_hh = jax.random.uniform(ks[2], (4 * H, H), jnp.float32, -scale, scale)
    b_ih = jax.random.uniform(ks[3], (4 * H,), jnp.float32, -scale, scale)
    b_hh = jax.random.uniform(ks[4], (4 * H,), jnp.float32, -scale, scale)
    w_out = jax.random.uniform(ks[5], (O, H), jnp.float32, -scale, scale)
    b_out = jax.random.uniform(ks[6], (O,), jnp.float32, -scale, scale)

    out = rnn_forward(x, w_ih, w_hh, b_ih, b_hh, w_out, b_out)
    out = jax.block_until_ready(out)

    ref = rnn_forward_ref(x, w_ih, w_hh, b_ih, b_hh, w_out, b_out)
    # Tolerance loosened vs. the pure-f32 version because the MXU operands
    # (x, W_ih^T, W_hh^T, W_out^T, h) are bf16 (accumulation stays f32).
    np.testing.assert_allclose(np.asarray(out), np.asarray(ref), rtol=5e-2, atol=5e-2)

    print("KERNEL_OK")
</pallas_src>

<mosaic_0001>
module attributes {stable_mosaic.version = 11 : i64} {
  func.func @kernel(%arg0: i32, %arg1: i32, %arg2: memref<8x8x16xf32, #tpu.memory_space<vmem>>, %arg3: memref<16x512xbf16, #tpu.memory_space<vmem>>, %arg4: memref<128x512xbf16, #tpu.memory_space<vmem>>, %arg5: memref<1x512xf32, #tpu.memory_space<vmem>>, %arg6: memref<128x128xbf16, #tpu.memory_space<vmem>>, %arg7: memref<1x128xf32, #tpu.memory_space<vmem>>, %arg8: memref<8x8x128xf32, #tpu.memory_space<vmem>>, %arg9: memref<8x128xf32, #tpu.memory_space<vmem>>, %arg10: memref<8x128xf32, #tpu.memory_space<vmem>>, %arg11: memref<8x8x512xf32, #tpu.memory_space<vmem>>, %arg12: memref<8x8x128xf32, #tpu.memory_space<vmem>>) attributes {dimension_semantics = [#tpu.dimension_semantics<parallel>, #tpu.dimension_semantics<arbitrary>], iteration_bounds = array<i64: 1, 1>, scalar_prefetch = 0 : i64, scratch_operands = 4 : i64, tpu.core_type = #tpu.core_type<tc>, window_params = [{transform_indices = @transform_0, window_bounds = array<i64: 8, 8, 16>}, {pipeline_mode = #tpu.pipeline_mode<synchronous>, transform_indices = @transform_1, window_bounds = array<i64: 16, 512>}, {pipeline_mode = #tpu.pipeline_mode<synchronous>, transform_indices = @transform_2, window_bounds = array<i64: 128, 512>}, {pipeline_mode = #tpu.pipeline_mode<synchronous>, transform_indices = @transform_3, window_bounds = array<i64: 1, 512>}, {pipeline_mode = #tpu.pipeline_mode<synchronous>, transform_indices = @transform_4, window_bounds = array<i64: 128, 128>}, {pipeline_mode = #tpu.pipeline_mode<synchronous>, transform_indices = @transform_5, window_bounds = array<i64: 1, 128>}, {transform_indices = @transform_6, window_bounds = array<i64: 8, 8, 128>}]} {
    %c0_i32 = arith.constant 0 : i32
    %0 = arith.cmpi eq, %arg1, %c0_i32 : i32
    %1 = arith.extui %0 : i1 to i32
    %c0_i32_0 = arith.constant 0 : i32
    %2 = arith.cmpi ne, %1, %c0_i32_0 : i32
    scf.if %2 {
      %cst_94 = arith.constant 0.000000e+00 : f32
      %243 = vector.broadcast %cst_94 : f32 to vector<8x128xf32>
      %c0_95 = arith.constant 0 : index
      %c0_96 = arith.constant 0 : index
      %244 = vector.load %arg9[%c0_95, %c0_96] : memref<8x128xf32, #tpu.memory_space<vmem>>, vector<8x128xf32>
      tpu.vector_store %arg9[%c0_95, %c0_96], %243 {strides = array<i32>} : memref<8x128xf32, #tpu.memory_space<vmem>>, vector<8x128xf32>,
      %cst_97 = arith.constant 0.000000e+00 : f32
      %245 = vector.broadcast %cst_97 : f32 to vector<8x128xf32>
      %c0_98 = arith.constant 0 : index
      %c0_99 = arith.constant 0 : index
      %246 = vector.load %arg10[%c0_98, %c0_99] : memref<8x128xf32, #tpu.memory_space<vmem>>, vector<8x128xf32>
      tpu.vector_store %arg10[%c0_98, %c0_99], %245 {strides = array<i32>} : memref<8x128xf32, #tpu.memory_space<vmem>>, vector<8x128xf32>,
    } else {
    }
    %c0 = arith.constant 0 : index
    %c0_1 = arith.constant 0 : index
    %c0_2 = arith.constant 0 : index
    %3 = vector.load %arg2[%c0, %c0_1, %c0_2] : memref<8x8x16xf32, #tpu.memory_space<vmem>>, vector<8x8x16xf32>
    %4 = arith.truncf %3 : vector<8x8x16xf32> to vector<8x8x16xbf16>
    %5 = vector.shape_cast %4 : vector<8x8x16xbf16> to vector<64x16xbf16>
    %c0_3 = arith.constant 0 : index
    %c0_4 = arith.constant 0 : index
    %6 = vector.load %arg3[%c0_3, %c0_4] : memref<16x512xbf16, #tpu.memory_space<vmem>>, vector<16x512xbf16>
    %cst = arith.constant dense<0.000000e+00> : vector<64x512xf32>
    %7 = tpu.matmul %5, %6, %cst {dimension_numbers = #tpu.dot_dimension_numbers<[1], [0], [0], [1], [0, 0, 1, 1], [], []>} : vector<64x16xbf16>, vector<16x512xbf16>, vector<64x512xf32> -> vector<64x512xf32>
    %c0_5 = arith.constant 0 : index
    %c0_6 = arith.constant 0 : index
    %8 = vector.load %arg5[%c0_5, %c0_6] : memref<1x512xf32, #tpu.memory_space<vmem>>, vector<1x512xf32>
    %9 = vector.broadcast %8 : vector<1x512xf32> to vector<64x512xf32>
    %10 = arith.addf %7, %9 : vector<64x512xf32>
    %11 = vector.shape_cast %10 : vector<64x512xf32> to vector<8x8x512xf32>
    %c0_7 = arith.constant 0 : index
    %c0_8 = arith.constant 0 : index
    %c0_9 = arith.constant 0 : index
    %12 = vector.load %arg11[%c0_7, %c0_8, %c0_9] : memref<8x8x512xf32, #tpu.memory_space<vmem>>, vector<8x8x512xf32>
    tpu.vector_store %arg11[%c0_7, %c0_8, %c0_9], %11 {strides = array<i32>} : memref<8x8x512xf32, #tpu.memory_space<vmem>>, vector<8x8x512xf32>,
    %c0_10 = arith.constant 0 : index
    %c0_11 = arith.constant 0 : index
    %13 = vector.load %arg9[%c0_10, %c0_11] : memref<8x128xf32, #tpu.memory_space<vmem>>, vector<8x128xf32>
    %c0_12 = arith.constant 0 : index
    %c0_13 = arith.constant 0 : index
    %14 = vector.load %arg10[%c0_12, %c0_13] : memref<8x128xf32, #tpu.memory_space<vmem>>, vector<8x128xf32>
    %c0_i32_14 = arith.constant 0 : i32
    %15 = arith.index_cast %c0_i32_14 : i32 to index
    %c0_15 = arith.constant 0 : index
    %c0_16 = arith.constant 0 : index
    %16 = vector.load %arg11[%15, %c0_15, %c0_16] : memref<8x8x512xf32, #tpu.memory_space<vmem>>, vector<1x8x512xf32>
    %17 = vector.shape_cast %16 : vector<1x8x512xf32> to vector<8x512xf32>
    %18 = arith.truncf %13 : vector<8x128xf32> to vector<8x128xbf16>
    %c0_17 = arith.constant 0 : index
    %c0_18 = arith.constant 0 : index
    %19 = vector.load %arg4[%c0_17, %c0_18] : memref<128x512xbf16, #tpu.memory_space<vmem>>, vector<128x512xbf16>
    %cst_19 = arith.constant dense<0.000000e+00> : vector<8x512xf32>
    %20 = tpu.matmul %18, %19, %cst_19 {dimension_numbers = #tpu.dot_dimension_numbers<[1], [0], [0], [1], [0, 0, 1, 1], [], []>} : vector<8x128xbf16>, vector<128x512xbf16>, vector<8x512xf32> -> vector<8x512xf32>
    %21 = arith.addf %17, %20 : vector<8x512xf32>
    %22 = vector.extract_strided_slice %21 {offsets = [0, 0], sizes = [8, 384], strides = [1, 1]} : vector<8x512xf32> to vector<8x384xf32>
    %23 = arith.negf %22 : vector<8x384xf32>
    %24 = math.exp %23 : vector<8x384xf32>
    %cst_20 = arith.constant 1.000000e+00 : f32
    %25 = vector.broadcast %cst_20 : f32 to vector<8x384xf32>
    %26 = arith.addf %25, %24 : vector<8x384xf32>
    %27 = arith.divf %25, %26 : vector<8x384xf32>
    %28 = vector.extract_strided_slice %21 {offsets = [0, 384], sizes = [8, 128], strides = [1, 1]} : vector<8x512xf32> to vector<8x128xf32>
    %29 = math.tanh %28 : vector<8x128xf32>
    %30 = vector.extract_strided_slice %27 {offsets = [0, 0], sizes = [8, 128], strides = [1, 1]} : vector<8x384xf32> to vector<8x128xf32>
    %31 = vector.extract_strided_slice %27 {offsets = [0, 128], sizes = [8, 128], strides = [1, 1]} : vector<8x384xf32> to vector<8x128xf32>
    %32 = vector.extract_strided_slice %27 {offsets = [0, 256], sizes = [8, 128], strides = [1, 1]} : vector<8x384xf32> to vector<8x128xf32>
    %33 = arith.mulf %31, %14 : vector<8x128xf32>
    %34 = arith.mulf %30, %29 : vector<8x128xf32>
    %35 = arith.addf %33, %34 : vector<8x128xf32>
    %36 = math.tanh %35 : vector<8x128xf32>
    %37 = arith.mulf %32, %36 : vector<8x128xf32>
    %38 = arith.index_cast %c0_i32_14 : i32 to index
    %c0_21 = arith.constant 0 : index
    %c0_22 = arith.constant 0 : index
    %39 = vector.load %arg12[%38, %c0_21, %c0_22] : memref<8x8x128xf32, #tpu.memory_space<vmem>>, vector<1x8x128xf32>
    %40 = vector.shape_cast %39 : vector<1x8x128xf32> to vector<8x128xf32>
    %41 = vector.shape_cast %37 : vector<8x128xf32> to vector<1x8x128xf32>
    tpu.vector_store %arg12[%38, %c0_21, %c0_22], %41 {strides = array<i32>} : memref<8x8x128xf32, #tpu.memory_space<vmem>>, vector<1x8x128xf32>,
    %c1_i32 = arith.constant 1 : i32
    %42 = arith.index_cast %c1_i32 : i32 to index
    %c0_23 = arith.constant 0 : index
    %c0_24 = arith.constant 0 : index
    %43 = vector.load %arg11[%42, %c0_23, %c0_24] : memref<8x8x512xf32, #tpu.memory_space<vmem>>, vector<1x8x512xf32>
    %44 = vector.shape_cast %43 : vector<1x8x512xf32> to vector<8x512xf32>
    %45 = arith.truncf %37 : vector<8x128xf32> to vector<8x128xbf16>
    %c0_25 = arith.constant 0 : index
    %c0_26 = arith.constant 0 : index
    %46 = vector.load %arg4[%c0_25, %c0_26] : memref<128x512xbf16, #tpu.memory_space<vmem>>, vector<128x512xbf16>
    %cst_27 = arith.constant dense<0.000000e+00> : vector<8x512xf32>
    %47 = tpu.matmul %45, %46, %cst_27 {dimension_numbers = #tpu.dot_dimension_numbers<[1], [0], [0], [1], [0, 0, 1, 1], [], []>} : vector<8x128xbf16>, vector<128x512xbf16>, vector<8x512xf32> -> vector<8x512xf32>
    %48 = arith.addf %44, %47 : vector<8x512xf32>
    %49 = vector.extract_strided_slice %48 {offsets = [0, 0], sizes = [8, 384], strides = [1, 1]} : vector<8x512xf32> to vector<8x384xf32>
    %50 = arith.negf %49 : vector<8x384xf32>
    %51 = math.exp %50 : vector<8x384xf32>
    %cst_28 = arith.constant 1.000000e+00 : f32
    %52 = vector.broadcast %cst_28 : f32 to vector<8x384xf32>
    %53 = arith.addf %52, %51 : vector<8x384xf32>
    %54 = arith.divf %52, %53 : vector<8x384xf32>
    %55 = vector.extract_strided_slice %48 {offsets = [0, 384], sizes = [8, 128], strides = [1, 1]} : vector<8x512xf32> to vector<8x128xf32>
    %56 = math.tanh %55 : vector<8x128xf32>
    %57 = vector.extract_strided_slice %54 {offsets = [0, 0], sizes = [8, 128], strides = [1, 1]} : vector<8x384xf32> to vector<8x128xf32>
    %58 = vector.extract_strided_slice %54 {offsets = [0, 128], sizes = [8, 128], strides = [1, 1]} : vector<8x384xf32> to vector<8x128xf32>
    %59 = vector.extract_strided_slice %54 {offsets = [0, 256], sizes = [8, 128], strides = [1, 1]} : vector<8x384xf32> to vector<8x128xf32>
    %60 = arith.mulf %58, %35 : vector<8x128xf32>
    %61 = arith.mulf %57, %56 : vector<8x128xf32>
    %62 = arith.addf %60, %61 : vector<8x128xf32>
    %63 = math.tanh %62 : vector<8x128xf32>
    %64 = arith.mulf %59, %63 : vector<8x128xf32>
    %65 = arith.index_cast %c1_i32 : i32 to index
    %c0_29 = arith.constant 0 : index
    %c0_30 = arith.constant 0 : index
    %66 = vector.load %arg12[%65, %c0_29, %c0_30] : memref<8x8x128xf32, #tpu.memory_space<vmem>>, vector<1x8x128xf32>
    %67 = vector.shape_cast %66 : vector<1x8x128xf32> to vector<8x128xf32>
    %68 = vector.shape_cast %64 : vector<8x128xf32> to vector<1x8x128xf32>
    tpu.vector_store %arg12[%65, %c0_29, %c0_30], %68 {strides = array<i32>} : memref<8x8x128xf32, #tpu.memory_space<vmem>>, vector<1x8x128xf32>,
    %c2_i32 = arith.constant 2 : i32
    %69 = arith.index_cast %c2_i32 : i32 to index
    %c0_31 = arith.constant 0 : index
    %c0_32 = arith.constant 0 : index
    %70 = vector.load %arg11[%69, %c0_31, %c0_32] : memref<8x8x512xf32, #tpu.memory_space<vmem>>, vector<1x8x512xf32>
    %71 = vector.shape_cast %70 : vector<1x8x512xf32> to vector<8x512xf32>
    %72 = arith.truncf %64 : vector<8x128xf32> to vector<8x128xbf16>
    %c0_33 = arith.constant 0 : index
    %c0_34 = arith.constant 0 : index
    %73 = vector.load %arg4[%c0_33, %c0_34] : memref<128x512xbf16, #tpu.memory_space<vmem>>, vector<128x512xbf16>
    %cst_35 = arith.constant dense<0.000000e+00> : vector<8x512xf32>
    %74 = tpu.matmul %72, %73, %cst_35 {dimension_numbers = #tpu.dot_dimension_numbers<[1], [0], [0], [1], [0, 0, 1, 1], [], []>} : vector<8x128xbf16>, vector<128x512xbf16>, vector<8x512xf32> -> vector<8x512xf32>
    %75 = arith.addf %71, %74 : vector<8x512xf32>
    %76 = vector.extract_strided_slice %75 {offsets = [0, 0], sizes = [8, 384], strides = [1, 1]} : vector<8x512xf32> to vector<8x384xf32>
    %77 = arith.negf %76 : vector<8x384xf32>
    %78 = math.exp %77 : vector<8x384xf32>
    %cst_36 = arith.constant 1.000000e+00 : f32
    %79 = vector.broadcast %cst_36 : f32 to vector<8x384xf32>
    %80 = arith.addf %79, %78 : vector<8x384xf32>
    %81 = arith.divf %79, %80 : vector<8x384xf32>
    %82 = vector.extract_strided_slice %75 {offsets = [0, 384], sizes = [8, 128], strides = [1, 1]} : vector<8x512xf32> to vector<8x128xf32>
    %83 = math.tanh %82 : vector<8x128xf32>
    %84 = vector.extract_strided_slice %81 {offsets = [0, 0], sizes = [8, 128], strides = [1, 1]} : vector<8x384xf32> to vector<8x128xf32>
    %85 = vector.extract_strided_slice %81 {offsets = [0, 128], sizes = [8, 128], strides = [1, 1]} : vector<8x384xf32> to vector<8x128xf32>
    %86 = vector.extract_strided_slice %81 {offsets = [0, 256], sizes = [8, 128], strides = [1, 1]} : vector<8x384xf32> to vector<8x128xf32>
    %87 = arith.mulf %85, %62 : vector<8x128xf32>
    %88 = arith.mulf %84, %83 : vector<8x128xf32>
    %89 = arith.addf %87, %88 : vector<8x128xf32>
    %90 = math.tanh %89 : vector<8x128xf32>
    %91 = arith.mulf %86, %90 : vector<8x128xf32>
    %92 = arith.index_cast %c2_i32 : i32 to index
    %c0_37 = arith.constant 0 : index
    %c0_38 = arith.constant 0 : index
    %93 = vector.load %arg12[%92, %c0_37, %c0_38] : memref<8x8x128xf32, #tpu.memory_space<vmem>>, vector<1x8x128xf32>
    %94 = vector.shape_cast %93 : vector<1x8x128xf32> to vector<8x128xf32>
    %95 = vector.shape_cast %91 : vector<8x128xf32> to vector<1x8x128xf32>
    tpu.vector_store %arg12[%92, %c0_37, %c0_38], %95 {strides = array<i32>} : memref<8x8x128xf32, #tpu.memory_space<vmem>>, vector<1x8x128xf32>,
    %c3_i32 = arith.constant 3 : i32
    %96 = arith.index_cast %c3_i32 : i32 to index
    %c0_39 = arith.constant 0 : index
    %c0_40 = arith.constant 0 : index
    %97 = vector.load %arg11[%96, %c0_39, %c0_40] : memref<8x8x512xf32, #tpu.memory_space<vmem>>, vector<1x8x512xf32>
    %98 = vector.shape_cast %97 : vector<1x8x512xf32> to vector<8x512xf32>
    %99 = arith.truncf %91 : vector<8x128xf32> to vector<8x128xbf16>
    %c0_41 = arith.constant 0 : index
    %c0_42 = arith.constant 0 : index
    %100 = vector.load %arg4[%c0_41, %c0_42] : memref<128x512xbf16, #tpu.memory_space<vmem>>, vector<128x512xbf16>
    %cst_43 = arith.constant dense<0.000000e+00> : vector<8x512xf32>
    %101 = tpu.matmul %99, %100, %cst_43 {dimension_numbers = #tpu.dot_dimension_numbers<[1], [0], [0], [1], [0, 0, 1, 1], [], []>} : vector<8x128xbf16>, vector<128x512xbf16>, vector<8x512xf32> -> vector<8x512xf32>
    %102 = arith.addf %98, %101 : vector<8x512xf32>
    %103 = vector.extract_strided_slice %102 {offsets = [0, 0], sizes = [8, 384], strides = [1, 1]} : vector<8x512xf32> to vector<8x384xf32>
    %104 = arith.negf %103 : vector<8x384xf32>
    %105 = math.exp %104 : vector<8x384xf32>
    %cst_44 = arith.constant 1.000000e+00 : f32
    %106 = vector.broadcast %cst_44 : f32 to vector<8x384xf32>
    %107 = arith.addf %106, %105 : vector<8x384xf32>
    %108 = arith.divf %106, %107 : vector<8x384xf32>
    %109 = vector.extract_strided_slice %102 {offsets = [0, 384], sizes = [8, 128], strides = [1, 1]} : vector<8x512xf32> to vector<8x128xf32>
    %110 = math.tanh %109 : vector<8x128xf32>
    %111 = vector.extract_strided_slice %108 {offsets = [0, 0], sizes = [8, 128], strides = [1, 1]} : vector<8x384xf32> to vector<8x128xf32>
    %112 = vector.extract_strided_slice %108 {offsets = [0, 128], sizes = [8, 128], strides = [1, 1]} : vector<8x384xf32> to vector<8x128xf32>
    %113 = vector.extract_strided_slice %108 {offsets = [0, 256], sizes = [8, 128], strides = [1, 1]} : vector<8x384xf32> to vector<8x128xf32>
    %114 = arith.mulf %112, %89 : vector<8x128xf32>
    %115 = arith.mulf %111, %110 : vector<8x128xf32>
    %116 = arith.addf %114, %115 : vector<8x128xf32>
    %117 = math.tanh %116 : vector<8x128xf32>
    %118 = arith.mulf %113, %117 : vector<8x128xf32>
    %119 = arith.index_cast %c3_i32 : i32 to index
    %c0_45 = arith.constant 0 : index
    %c0_46 = arith.constant 0 : index
    %120 = vector.load %arg12[%119, %c0_45, %c0_46] : memref<8x8x128xf32, #tpu.memory_space<vmem>>, vector<1x8x128xf32>
    %121 = vector.shape_cast %120 : vector<1x8x128xf32> to vector<8x128xf32>
    %122 = vector.shape_cast %118 : vector<8x128xf32> to vector<1x8x128xf32>
    tpu.vector_store %arg12[%119, %c0_45, %c0_46], %122 {strides = array<i32>} : memref<8x8x128xf32, #tpu.memory_space<vmem>>, vector<1x8x128xf32>,
    %c4_i32 = arith.constant 4 : i32
    %123 = arith.index_cast %c4_i32 : i32 to index
    %c0_47 = arith.constant 0 : index
    %c0_48 = arith.constant 0 : index
    %124 = vector.load %arg11[%123, %c0_47, %c0_48] : memref<8x8x512xf32, #tpu.memory_space<vmem>>, vector<1x8x512xf32>
    %125 = vector.shape_cast %124 : vector<1x8x512xf32> to vector<8x512xf32>
    %126 = arith.truncf %118 : vector<8x128xf32> to vector<8x128xbf16>
    %c0_49 = arith.constant 0 : index
    %c0_50 = arith.constant 0 : index
    %127 = vector.load %arg4[%c0_49, %c0_50] : memref<128x512xbf16, #tpu.memory_space<vmem>>, vector<128x512xbf16>
    %cst_51 = arith.constant dense<0.000000e+00> : vector<8x512xf32>
    %128 = tpu.matmul %126, %127, %cst_51 {dimension_numbers = #tpu.dot_dimension_numbers<[1], [0], [0], [1], [0, 0, 1, 1], [], []>} : vector<8x128xbf16>, vector<128x512xbf16>, vector<8x512xf32> -> vector<8x512xf32>
    %129 = arith.addf %125, %128 : vector<8x512xf32>
    %130 = vector.extract_strided_slice %129 {offsets = [0, 0], sizes = [8, 384], strides = [1, 1]} : vector<8x512xf32> to vector<8x384xf32>
    %131 = arith.negf %130 : vector<8x384xf32>
    %132 = math.exp %131 : vector<8x384xf32>
    %cst_52 = arith.constant 1.000000e+00 : f32
    %133 = vector.broadcast %cst_52 : f32 to vector<8x384xf32>
    %134 = arith.addf %133, %132 : vector<8x384xf32>
    %135 = arith.divf %133, %134 : vector<8x384xf32>
    %136 = vector.extract_strided_slice %129 {offsets = [0, 384], sizes = [8, 128], strides = [1, 1]} : vector<8x512xf32> to vector<8x128xf32>
    %137 = math.tanh %136 : vector<8x128xf32>
    %138 = vector.extract_strided_slice %135 {offsets = [0, 0], sizes = [8, 128], strides = [1, 1]} : vector<8x384xf32> to vector<8x128xf32>
    %139 = vector.extract_strided_slice %135 {offsets = [0, 128], sizes = [8, 128], strides = [1, 1]} : vector<8x384xf32> to vector<8x128xf32>
    %140 = vector.extract_strided_slice %135 {offsets = [0, 256], sizes = [8, 128], strides = [1, 1]} : vector<8x384xf32> to vector<8x128xf32>
    %141 = arith.mulf %139, %116 : vector<8x128xf32>
    %142 = arith.mulf %138, %137 : vector<8x128xf32>
    %143 = arith.addf %141, %142 : vector<8x128xf32>
    %144 = math.tanh %143 : vector<8x128xf32>
    %145 = arith.mulf %140, %144 : vector<8x128xf32>
    %146 = arith.index_cast %c4_i32 : i32 to index
    %c0_53 = arith.constant 0 : index
    %c0_54 = arith.constant 0 : index
    %147 = vector.load %arg12[%146, %c0_53, %c0_54] : memref<8x8x128xf32, #tpu.memory_space<vmem>>, vector<1x8x128xf32>
    %148 = vector.shape_cast %147 : vector<1x8x128xf32> to vector<8x128xf32>
    %149 = vector.shape_cast %145 : vector<8x128xf32> to vector<1x8x128xf32>
    tpu.vector_store %arg12[%146, %c0_53, %c0_54], %149 {strides = array<i32>} : memref<8x8x128xf32, #tpu.memory_space<vmem>>, vector<1x8x128xf32>,
    %c5_i32 = arith.constant 5 : i32
    %150 = arith.index_cast %c5_i32 : i32 to index
    %c0_55 = arith.constant 0 : index
    %c0_56 = arith.constant 0 : index
    %151 = vector.load %arg11[%150, %c0_55, %c0_56] : memref<8x8x512xf32, #tpu.memory_space<vmem>>, vector<1x8x512xf32>
    %152 = vector.shape_cast %151 : vector<1x8x512xf32> to vector<8x512xf32>
    %153 = arith.truncf %145 : vector<8x128xf32> to vector<8x128xbf16>
    %c0_57 = arith.constant 0 : index
    %c0_58 = arith.constant 0 : index
    %154 = vector.load %arg4[%c0_57, %c0_58] : memref<128x512xbf16, #tpu.memory_space<vmem>>, vector<128x512xbf16>
    %cst_59 = arith.constant dense<0.000000e+00> : vector<8x512xf32>
    %155 = tpu.matmul %153, %154, %cst_59 {dimension_numbers = #tpu.dot_dimension_numbers<[1], [0], [0], [1], [0, 0, 1, 1], [], []>} : vector<8x128xbf16>, vector<128x512xbf16>, vector<8x512xf32> -> vector<8x512xf32>
    %156 = arith.addf %152, %155 : vector<8x512xf32>
    %157 = vector.extract_strided_slice %156 {offsets = [0, 0], sizes = [8, 384], strides = [1, 1]} : vector<8x512xf32> to vector<8x384xf32>
    %158 = arith.negf %157 : vector<8x384xf32>
    %159 = math.exp %158 : vector<8x384xf32>
    %cst_60 = arith.constant 1.000000e+00 : f32
    %160 = vector.broadcast %cst_60 : f32 to vector<8x384xf32>
    %161 = arith.addf %160, %159 : vector<8x384xf32>
    %162 = arith.divf %160, %161 : vector<8x384xf32>
    %163 = vector.extract_strided_slice %156 {offsets = [0, 384], sizes = [8, 128], strides = [1, 1]} : vector<8x512xf32> to vector<8x128xf32>
    %164 = math.tanh %163 : vector<8x128xf32>
    %165 = vector.extract_strided_slice %162 {offsets = [0, 0], sizes = [8, 128], strides = [1, 1]} : vector<8x384xf32> to vector<8x128xf32>
    %166 = vector.extract_strided_slice %162 {offsets = [0, 128], sizes = [8, 128], strides = [1, 1]} : vector<8x384xf32> to vector<8x128xf32>
    %167 = vector.extract_strided_slice %162 {offsets = [0, 256], sizes = [8, 128], strides = [1, 1]} : vector<8x384xf32> to vector<8x128xf32>
    %168 = arith.mulf %166, %143 : vector<8x128xf32>
    %169 = arith.mulf %165, %164 : vector<8x128xf32>
    %170 = arith.addf %168, %169 : vector<8x128xf32>
    %171 = math.tanh %170 : vector<8x128xf32>
    %172 = arith.mulf %167, %171 : vector<8x128xf32>
    %173 = arith.index_cast %c5_i32 : i32 to index
    %c0_61 = arith.constant 0 : index
    %c0_62 = arith.constant 0 : index
    %174 = vector.load %arg12[%173, %c0_61, %c0_62] : memref<8x8x128xf32, #tpu.memory_space<vmem>>, vector<1x8x128xf32>
    %175 = vector.shape_cast %174 : vector<1x8x128xf32> to vector<8x128xf32>
    %176 = vector.shape_cast %172 : vector<8x128xf32> to vector<1x8x128xf32>
    tpu.vector_store %arg12[%173, %c0_61, %c0_62], %176 {strides = array<i32>} : memref<8x8x128xf32, #tpu.memory_space<vmem>>, vector<1x8x128xf32>,
    %c6_i32 = arith.constant 6 : i32
    %177 = arith.index_cast %c6_i32 : i32 to index
    %c0_63 = arith.constant 0 : index
    %c0_64 = arith.constant 0 : index
    %178 = vector.load %arg11[%177, %c0_63, %c0_64] : memref<8x8x512xf32, #tpu.memory_space<vmem>>, vector<1x8x512xf32>
    %179 = vector.shape_cast %178 : vector<1x8x512xf32> to vector<8x512xf32>
    %180 = arith.truncf %172 : vector<8x128xf32> to vector<8x128xbf16>
    %c0_65 = arith.constant 0 : index
    %c0_66 = arith.constant 0 : index
    %181 = vector.load %arg4[%c0_65, %c0_66] : memref<128x512xbf16, #tpu.memory_space<vmem>>, vector<128x512xbf16>
    %cst_67 = arith.constant dense<0.000000e+00> : vector<8x512xf32>
    %182 = tpu.matmul %180, %181, %cst_67 {dimension_numbers = #tpu.dot_dimension_numbers<[1], [0], [0], [1], [0, 0, 1, 1], [], []>} : vector<8x128xbf16>, vector<128x512xbf16>, vector<8x512xf32> -> vector<8x512xf32>
    %183 = arith.addf %179, %182 : vector<8x512xf32>
    %184 = vector.extract_strided_slice %183 {offsets = [0, 0], sizes = [8, 384], strides = [1, 1]} : vector<8x512xf32> to vector<8x384xf32>
    %185 = arith.negf %184 : vector<8x384xf32>
    %186 = math.exp %185 : vector<8x384xf32>
    %cst_68 = arith.constant 1.000000e+00 : f32
    %187 = vector.broadcast %cst_68 : f32 to vector<8x384xf32>
    %188 = arith.addf %187, %186 : vector<8x384xf32>
    %189 = arith.divf %187, %188 : vector<8x384xf32>
    %190 = vector.extract_strided_slice %183 {offsets = [0, 384], sizes = [8, 128], strides = [1, 1]} : vector<8x512xf32> to vector<8x128xf32>
    %191 = math.tanh %190 : vector<8x128xf32>
    %192 = vector.extract_strided_slice %189 {offsets = [0, 0], sizes = [8, 128], strides = [1, 1]} : vector<8x384xf32> to vector<8x128xf32>
    %193 = vector.extract_strided_slice %189 {offsets = [0, 128], sizes = [8, 128], strides = [1, 1]} : vector<8x384xf32> to vector<8x128xf32>
    %194 = vector.extract_strided_slice %189 {offsets = [0, 256], sizes = [8, 128], strides = [1, 1]} : vector<8x384xf32> to vector<8x128xf32>
    %195 = arith.mulf %193, %170 : vector<8x128xf32>
    %196 = arith.mulf %192, %191 : vector<8x128xf32>
    %197 = arith.addf %195, %196 : vector<8x128xf32>
    %198 = math.tanh %197 : vector<8x128xf32>
    %199 = arith.mulf %194, %198 : vector<8x128xf32>
    %200 = arith.index_cast %c6_i32 : i32 to index
    %c0_69 = arith.constant 0 : index
    %c0_70 = arith.constant 0 : index
    %201 = vector.load %arg12[%200, %c0_69, %c0_70] : memref<8x8x128xf32, #tpu.memory_space<vmem>>, vector<1x8x128xf32>
    %202 = vector.shape_cast %201 : vector<1x8x128xf32> to vector<8x128xf32>
    %203 = vector.shape_cast %199 : vector<8x128xf32> to vector<1x8x128xf32>
    tpu.vector_store %arg12[%200, %c0_69, %c0_70], %203 {strides = array<i32>} : memref<8x8x128xf32, #tpu.memory_space<vmem>>, vector<1x8x128xf32>,
    %c7_i32 = arith.constant 7 : i32
    %204 = arith.index_cast %c7_i32 : i32 to index
    %c0_71 = arith.constant 0 : index
    %c0_72 = arith.constant 0 : index
    %205 = vector.load %arg11[%204, %c0_71, %c0_72] : memref<8x8x512xf32, #tpu.memory_space<vmem>>, vector<1x8x512xf32>
    %206 = vector.shape_cast %205 : vector<1x8x512xf32> to vector<8x512xf32>
    %207 = arith.truncf %199 : vector<8x128xf32> to vector<8x128xbf16>
    %c0_73 = arith.constant 0 : index
    %c0_74 = arith.constant 0 : index
    %208 = vector.load %arg4[%c0_73, %c0_74] : memref<128x512xbf16, #tpu.memory_space<vmem>>, vector<128x512xbf16>
    %cst_75 = arith.constant dense<0.000000e+00> : vector<8x512xf32>
    %209 = tpu.matmul %207, %208, %cst_75 {dimension_numbers = #tpu.dot_dimension_numbers<[1], [0], [0], [1], [0, 0, 1, 1], [], []>} : vector<8x128xbf16>, vector<128x512xbf16>, vector<8x512xf32> -> vector<8x512xf32>
    %210 = arith.addf %206, %209 : vector<8x512xf32>
    %211 = vector.extract_strided_slice %210 {offsets = [0, 0], sizes = [8, 384], strides = [1, 1]} : vector<8x512xf32> to vector<8x384xf32>
    %212 = arith.negf %211 : vector<8x384xf32>
    %213 = math.exp %212 : vector<8x384xf32>
    %cst_76 = arith.constant 1.000000e+00 : f32
    %214 = vector.broadcast %cst_76 : f32 to vector<8x384xf32>
    %215 = arith.addf %214, %213 : vector<8x384xf32>
    %216 = arith.divf %214, %215 : vector<8x384xf32>
    %217 = vector.extract_strided_slice %210 {offsets = [0, 384], sizes = [8, 128], strides = [1, 1]} : vector<8x512xf32> to vector<8x128xf32>
    %218 = math.tanh %217 : vector<8x128xf32>
    %219 = vector.extract_strided_slice %216 {offsets = [0, 0], sizes = [8, 128], strides = [1, 1]} : vector<8x384xf32> to vector<8x128xf32>
    %220 = vector.extract_strided_slice %216 {offsets = [0, 128], sizes = [8, 128], strides = [1, 1]} : vector<8x384xf32> to vector<8x128xf32>
    %221 = vector.extract_strided_slice %216 {offsets = [0, 256], sizes = [8, 128], strides = [1, 1]} : vector<8x384xf32> to vector<8x128xf32>
    %222 = arith.mulf %220, %197 : vector<8x128xf32>
    %223 = arith.mulf %219, %218 : vector<8x128xf32>
    %224 = arith.addf %222, %223 : vector<8x128xf32>
    %225 = math.tanh %224 : vector<8x128xf32>
    %226 = arith.mulf %221, %225 : vector<8x128xf32>
    %227 = arith.index_cast %c7_i32 : i32 to index
    %c0_77 = arith.constant 0 : index
    %c0_78 = arith.constant 0 : index
    %228 = vector.load %arg12[%227, %c0_77, %c0_78] : memref<8x8x128xf32, #tpu.memory_space<vmem>>, vector<1x8x128xf32>
    %229 = vector.shape_cast %228 : vector<1x8x128xf32> to vector<8x128xf32>
    %230 = vector.shape_cast %226 : vector<8x128xf32> to vector<1x8x128xf32>
    tpu.vector_store %arg12[%227, %c0_77, %c0_78], %230 {strides = array<i32>} : memref<8x8x128xf32, #tpu.memory_space<vmem>>, vector<1x8x128xf32>,
    %c8_i32 = arith.constant 8 : i32
    %c0_79 = arith.constant 0 : index
    %c0_80 = arith.constant 0 : index
    %231 = vector.load %arg9[%c0_79, %c0_80] : memref<8x128xf32, #tpu.memory_space<vmem>>, vector<8x128xf32>
    tpu.vector_store %arg9[%c0_79, %c0_80], %226 {strides = array<i32>} : memref<8x128xf32, #tpu.memory_space<vmem>>, vector<8x128xf32>,
    %c0_81 = arith.constant 0 : index
    %c0_82 = arith.constant 0 : index
    %232 = vector.load %arg10[%c0_81, %c0_82] : memref<8x128xf32, #tpu.memory_space<vmem>>, vector<8x128xf32>
    tpu.vector_store %arg10[%c0_81, %c0_82], %224 {strides = array<i32>} : memref<8x128xf32, #tpu.memory_space<vmem>>, vector<8x128xf32>,
    %c0_83 = arith.constant 0 : index
    %c0_84 = arith.constant 0 : index
    %c0_85 = arith.constant 0 : index
    %233 = vector.load %arg12[%c0_83, %c0_84, %c0_85] : memref<8x8x128xf32, #tpu.memory_space<vmem>>, vector<8x8x128xf32>
    %234 = arith.truncf %233 : vector<8x8x128xf32> to vector<8x8x128xbf16>
    %235 = vector.shape_cast %234 : vector<8x8x128xbf16> to vector<64x128xbf16>
    %c0_86 = arith.constant 0 : index
    %c0_87 = arith.constant 0 : index
    %236 = vector.load %arg6[%c0_86, %c0_87] : memref<128x128xbf16, #tpu.memory_space<vmem>>, vector<128x128xbf16>
    %cst_88 = arith.constant dense<0.000000e+00> : vector<64x128xf32>
    %237 = tpu.matmul %235, %236, %cst_88 {dimension_numbers = #tpu.dot_dimension_numbers<[1], [0], [0], [1], [0, 0, 1, 1], [], []>} : vector<64x128xbf16>, vector<128x128xbf16>, vector<64x128xf32> -> vector<64x128xf32>
    %c0_89 = arith.constant 0 : index
    %c0_90 = arith.constant 0 : index
    %238 = vector.load %arg7[%c0_89, %c0_90] : memref<1x128xf32, #tpu.memory_space<vmem>>, vector<1x128xf32>
    %239 = vector.broadcast %238 : vector<1x128xf32> to vector<64x128xf32>
    %240 = arith.addf %237, %239 : vector<64x128xf32>
    %241 = vector.shape_cast %240 : vector<64x128xf32> to vector<8x8x128xf32>
    %c0_91 = arith.constant 0 : index
    %c0_92 = arith.constant 0 : index
    %c0_93 = arith.constant 0 : index
    %242 = vector.load %arg8[%c0_91, %c0_92, %c0_93] : memref<8x8x128xf32, #tpu.memory_space<vmem>>, vector<8x8x128xf32>
    tpu.vector_store %arg8[%c0_91, %c0_92, %c0_93], %241 {strides = array<i32>} : memref<8x8x128xf32, #tpu.memory_space<vmem>>, vector<8x8x128xf32>,
    return
  }
  func.func @transform_0(%arg0: i32, %arg1: i32) -> (i32, i32, i32) {
    %c0_i32 = arith.constant 0 : i32
    %c0_i32_0 = arith.constant 0 : i32
    return %arg1, %arg0, %c0_i32 : i32, i32, i32
  }
  func.func @transform_1(%arg0: i32, %arg1: i32) -> (i32, i32) {
    %c0_i32 = arith.constant 0 : i32
    %c0_i32_0 = arith.constant 0 : i32
    %c0_i32_1 = arith.constant 0 : i32
    return %c0_i32, %c0_i32_0 : i32, i32
  }
  func.func @transform_2(%arg0: i32, %arg1: i32) -> (i32, i32) {
    %c0_i32 = arith.constant 0 : i32
    %c0_i32_0 = arith.constant 0 : i32
    %c0_i32_1 = arith.constant 0 : i32
    return %c0_i32, %c0_i32_0 : i32, i32
  }
  func.func @transform_3(%arg0: i32, %arg1: i32) -> (i32, i32) {
    %c0_i32 = arith.constant 0 : i32
    %c0_i32_0 = arith.constant 0 : i32
    %c0_i32_1 = arith.constant 0 : i32
    return %c0_i32, %c0_i32_0 : i32, i32
  }
  func.func @transform_4(%arg0: i32, %arg1: i32) -> (i32, i32) {
    %c0_i32 = arith.constant 0 : i32
    %c0_i32_0 = arith.constant 0 : i32
    %c0_i32_1 = arith.constant 0 : i32
    return %c0_i32, %c0_i32_0 : i32, i32
  }
  func.func @transform_5(%arg0: i32, %arg1: i32) -> (i32, i32) {
    %c0_i32 = arith.constant 0 : i32
    %c0_i32_0 = arith.constant 0 : i32
    %c0_i32_1 = arith.constant 0 : i32
    return %c0_i32, %c0_i32_0 : i32, i32
  }
  func.func @transform_6(%arg0: i32, %arg1: i32) -> (i32, i32, i32) {
    %c0_i32 = arith.constant 0 : i32
    %c0_i32_0 = arith.constant 0 : i32
    return %arg1, %arg0, %c0_i32 : i32, i32, i32
  }
}

</mosaic_0001>

<bundles_post_ra>
// kernel: tpu_custom_call.1
= control target key start
LH: loop header
LB: loop body
LE: loop exit
PB: predicated region body
PF: predicated region fallthrough
CT: control target
= control target key end

     0   :  { %11 = vsyncpa [#allocation7], 0  ;;  %s4491_s0 = inlined_call_operand.hbm [shape: f32[8,8,16], index: 0, kind: input, shape index: {}]   ;;  %s4492_s1 = inlined_call_operand.hbm [shape: bf16[16,512], index: 1, kind: input, shape index: {}]   ;;  %s4493_s2 = inlined_call_operand.hbm [shape: bf16[128,512], index: 2, kind: input, shape index: {}]   ;;  %s4494_s3 = inlined_call_operand.vmem [shape: f32[1,512], index: 3, kind: input, shape index: {}]   ;;  %s4495_s4 = inlined_call_operand.hbm [shape: bf16[128,128], index: 4, kind: input, shape index: {}]   ;;  %s4496_s5 = inlined_call_operand.vmem [shape: f32[1,128], index: 5, kind: input, shape index: {}]   ;;  %s4497_s6 = inlined_call_operand.hbm [shape: f32[8,8,128], index: 6, kind: output, shape index: {}]  }
   0x1   :  { %12 = vsyncpa [#allocation10], 0 }
   0x2   :  { %13 = vsyncpa [#allocation13], 0 }
   0x3   :  { %14 = vsyncpa [#allocation8], 0  ;;  %s3775_s21 = smov [#allocation9]   ;;  %s3657_s25 = scalar_lea.hbm %s4492_s1, 512 }
   0x4   :  { %s32_s22 = sshll.u32 %s3775_s21, 4  ;;  %p3658_p0 = scmp.ne.s32.totalorder %s4492_s1, %s3657_s25  ;;  %s33_s22 = int_to_ptr.vmem [resolvable:$true] %s32_s22 }
   0x5   :  { %p3661_p1 = scmp.lt.u32.totalorder %s3657_s25, %s4492_s1 }
   0x7   :  { %p3663_p2 = pnand %p3661_p1, %p3658_p0 }
   0x9   :  { %3666 = shalt.err (!%p3663_p2)
}
   0xa   :  { %s3667_s30 = scalar_lea.vmem %s33_s22, 512  ;;  %p3672_p4 = scmp.lt.s32.totalorder %s33_s22, %s33_s22 }
   0xb   :  { %p3668_p3 = scmp.ne.s32.totalorder %s33_s22, %s3667_s30  ;;  %p3673_p5 = scmp.lt.s32.totalorder %s3667_s30, %s3667_s30 }
   0xd   :  { %p3674_p6 = por %p3673_p5, %p3672_p4 }
   0xf   :  { %p3675_p7 = pnand %p3674_p6, %p3668_p3 }
  0x11   :  { %3678 = shalt.err (!%p3675_p7)
}
  0x12   :  { %s3776_s7 = smov 256   ;;  %s3777_s8 = smov 16  }
  0x13   :  { %38 = dma.hbm_to_vmem [thread:$0]  %s4492_s1, 512, %s33_s22, [#allocation10], %s3776_s7, %s3776_s7, %s3777_s8  }
  0x14   :  { %s3778_s11 = smov [#allocation6]   ;;  %s3679_s15 = scalar_lea.hbm %s4491_s0, 1024 }
  0x15   :  { %s20_s12 = sshll.u32 %s3778_s11, 4  ;;  %p3680_p8 = scmp.ne.s32.totalorder %s4491_s0, %s3679_s15  ;;  %s21_s12 = int_to_ptr.vmem [resolvable:$true] %s20_s12 }
  0x16   :  { %p3683_p9 = scmp.lt.u32.totalorder %s3679_s15, %s4491_s0 }
  0x18   :  { %p3685_p10 = pnand %p3683_p9, %p3680_p8 }
  0x1a   :  { %3688 = shalt.err (!%p3685_p10)
}
  0x1b   :  { %s3689_s20 = scalar_lea.vmem %s21_s12, 1024  ;;  %p3694_p12 = scmp.lt.s32.totalorder %s21_s12, %s21_s12 }
  0x1c   :  { %p3690_p11 = scmp.ne.s32.totalorder %s21_s12, %s3689_s20  ;;  %p3695_p13 = scmp.lt.s32.totalorder %s3689_s20, %s3689_s20 }
  0x1e   :  { %p3696_p0 = por %p3695_p13, %p3694_p12 }
  0x20   :  { %p3697_p1 = pnand %p3696_p0, %p3690_p11 }
  0x22   :  { %3700 = shalt.err (!%p3697_p1)
}
  0x23   :  { %s3779_s1 = smov 128   ;;  %s3780_s21 = smov 8  }
  0x24   :  { %26 = dma.hbm_to_vmem [thread:$0]  %s4491_s0, 1024, %s21_s12, [#allocation7], %s3779_s1, %s3779_s1, %s3780_s21  }
  0x25   :  { %s3781_s24 = smov [#allocation11]   ;;  %s3782_s26 = smov [#allocation12]  }
  0x26   :  { %s44_s25 = sshll.u32 %s3781_s24, 4  ;;  %s58_s27 = sshll.u32 %s3782_s26, 4  ;;  %s45_s25 = int_to_ptr.vmem [resolvable:$true] %s44_s25  ;;  %s3853_s27 = int_to_ptr.vmem [resolvable:$true] %s58_s27 }
  0x27   :  { %s3701_s30 = scalar_lea.hbm %s4493_s2, 4096 }
  0x28   :  { %p3702_p2 = scmp.ne.s32.totalorder %s4493_s2, %s3701_s30  ;;  %p3705_p3 = scmp.lt.u32.totalorder %s3701_s30, %s4493_s2 }
  0x2a   :  { %p3707_p4 = pnand %p3705_p3, %p3702_p2 }
  0x2c   :  { %3710 = shalt.err (!%p3707_p4)
}
  0x2d   :  { %s3711_s0 = scalar_lea.vmem %s45_s25, 4096  ;;  %p3716_p6 = scmp.lt.s32.totalorder %s45_s25, %s45_s25 }
  0x2e   :  { %p3712_p5 = scmp.ne.s32.totalorder %s45_s25, %s3711_s0  ;;  %p3717_p7 = scmp.lt.s32.totalorder %s3711_s0, %s3711_s0 }
  0x30   :  { %p3718_p8 = por %p3717_p7, %p3716_p6 }
  0x32   :  { %p3719_p9 = pnand %p3718_p8, %p3712_p5 }
  0x34   :  { %3722 = shalt.err (!%p3719_p9)
}
  0x35   :  { %50 = dma.hbm_to_vmem [thread:$0]  %s4493_s2, 4096, %s45_s25, [#allocation10], %s3776_s7, %s3776_s7, %s3777_s8  }
  0x36   :  { %s3723_s17 = scalar_lea.hbm %s4495_s4, 1024 }
  0x37   :  { %p3724_p10 = scmp.ne.s32.totalorder %s4495_s4, %s3723_s17  ;;  %p3727_p11 = scmp.lt.u32.totalorder %s3723_s17, %s4495_s4 }
  0x39   :  { %p3729_p12 = pnand %p3727_p11, %p3724_p10 }
  0x3b   :  { %3732 = shalt.err (!%p3729_p12)
}
  0x3c   :  { %s3733_s23 = scalar_lea.vmem %s3853_s27, 1024  ;;  %p3738_p0 = scmp.lt.s32.totalorder %s3853_s27, %s3853_s27 }
  0x3d   :  { %p3734_p13 = scmp.ne.s32.totalorder %s3853_s27, %s3733_s23  ;;  %p3739_p1 = scmp.lt.s32.totalorder %s3733_s23, %s3733_s23 }
  0x3f   :  { %p3740_p2 = por %p3739_p1, %p3738_p0 }
  0x41   :  { %p3741_p3 = pnand %p3740_p2, %p3734_p13 }
  0x43   :  { %3744 = shalt.err (!%p3741_p3)
}
  0x44   :  { %s3783_s2 = smov 64   ;;  %s3784_s7 = smov 4  }
  0x45   :  { %64 = dma.hbm_to_vmem [thread:$0]  %s4495_s4, 1024, %s3853_s27, [#allocation13], %s3783_s2, %s3783_s2, %s3784_s7  }
  0x46   :  { %3767 = dma.done.wait [#allocation7], 1024  }
  0x47   :  { %3768 = vsyncadd [#allocation7], 4294966272 }
  0x48   :  { %3769 = dma.done.wait [#allocation10], 4608  }
  0x49   :  { %3770 = vsyncadd [#allocation10], 4294962688 }
  0x4a   :  { %3771 = dma.done.wait [#allocation13], 1024  }
  0x4b   :  { %3772 = vsyncadd [#allocation13], 4294966272  ;;  %v4498_v0 = vmov 0   ;;  %v3410_v1 = vld [vmem:[#allocation9 + $0xc] ss:$16 sps:$4 sm:$0xff]   ;;  %v86_v3 = vld [vmem:[#allocation6] sm:$0xff]  ;;  %v108_v50 = vlaneseq }
  0x4c   :  { %286 = vmatprep.mubr.bf16.mxu1 %v4498_v0  ;;  %213 = vmatprep.mubr.bf16.mxu0 %v4498_v0  ;;  %v3412_v2 = vld [vmem:[#allocation9 + $0x8] ss:$16 sps:$4 sm:$0xff]   ;;  %v3889_v6 = vld [vmem:[#allocation11] ss:$16 sps:$4 sm:$0xff]   ;;  %vm168_vm0 = vcmask 130048   ;;  %v3786_v37 = vmov 0.0|0.0  }
  0x4d   :  { %v87_v4 = vld [vmem:[#allocation6 + $0x8] sm:$0xff]  ;;  %254 = vmatprep.subr.bf16.mxu1 %v3410_v1  ;;  %v3891_v7 = vld [vmem:[#allocation11 + $0x4] ss:$16 sps:$4 sm:$0xff]   ;;  %v3897_v9 = vld [vmem:[#allocation11 + $0x20] ss:$16 sps:$4 sm:$0xff]   ;;  %v109_v51 = vshrl.u32 %v108_v50, 7 }
  0x4e   :  { %v3353_v5 = vpack.c.bf16 %v87_v4, %v86_v3  ;;  %255 = vmatpush1.bf16.msra.mxu1 %v3412_v2  ;;  %v3893_v8 = vld [vmem:[#allocation11 + $0x24] ss:$16 sps:$4 sm:$0xff]   ;;  %v89_v11 = vld [vmem:[#allocation6 + $0x18] sm:$0xff]  ;;  %v3905_v14 = vld [vmem:[#allocation11 + $0x40] ss:$16 sps:$4 sm:$0xff]  }
  0x4f   :  { %558 = vmatprep.subr.bf16.mxu1 %v3891_v7  ;;  %v88_v10 = vld [vmem:[#allocation6 + $0x10] sm:$0xff]  ;;  %v90_v19 = vld [vmem:[#allocation6 + $0x20] sm:$0xff]  ;;  %v91_v20 = vld [vmem:[#allocation6 + $0x28] sm:$0xff]  ;;  %v118_v52 = vsub.s32 2, %v109_v51  ;;  %v122_v54 = vsub.s32 3, %v109_v51 }
  0x50   :  { %v3902_v12 = vld [vmem:[#allocation11 + $0x44] ss:$16 sps:$4 sm:$0xff]   ;;  %v3354_v13 = vpack.c.bf16 %v89_v11, %v88_v10  ;;  %v3910_v16 = vld [vmem:[#allocation11 + $0x60] ss:$16 sps:$4 sm:$0xff]   ;;  %v3355_v22 = vpack.c.bf16 %v91_v20, %v90_v19  ;;  %v93_v27 = vld [vmem:[#allocation6 + $0x38] sm:$0xff]  ;;  %v110_v11 = vsub.s32 0, %v109_v51 }
  0x51   :  { %3056 = vmatmul.mubr.msk.bf16.vlgmr.msra.gmra.mrb[0].mxu1 %vm168_vm0, %v3353_v5  ;;  %v3908_v15 = vld [vmem:[#allocation11 + $0x64] ss:$16 sps:$4 sm:$0xff]   ;;  %v3436_v18 = vld [vmem:[#allocation9] ss:$16 sps:$4 sm:$0xff]   ;;  %v3951_v33 = vld [vmem:[#allocation11 + $0xc] ss:$16 sps:$4 sm:$0xff]  }
  0x52   :  { %559 = vmatpush1.bf16.msra.mxu1 %v3889_v6  ;;  %296 = vmatprep.mubr.bf16.mxu1 %v4498_v0  ;;  %v3434_v17 = vld [vmem:[#allocation9 + $0x4] ss:$16 sps:$4 sm:$0xff]   ;;  %v3920_v23 = vld [vmem:[#allocation11 + $0x80] ss:$16 sps:$4 sm:$0xff]   ;;  %v3957_v34 = vld [vmem:[#allocation11 + $0x8] ss:$16 sps:$4 sm:$0xff]  }
  0x53   :  { %560 = vmatprep.subr.bf16.mxu1 %v3893_v8  ;;  %v3916_v21 = vld [vmem:[#allocation11 + $0x84] ss:$16 sps:$4 sm:$0xff]   ;;  %181 = vmatprep.subr.bf16.mxu0 %v3434_v17  ;;  %v3929_v25 = vld [vmem:[#allocation11 + $0xa0] ss:$16 sps:$4 sm:$0xff]   ;;  %v3960_v35 = vld [vmem:[#allocation11 + $0x2c] ss:$16 sps:$4 sm:$0xff]  }
  0x54   :  { %182 = vmatpush1.bf16.msra.mxu0 %v3436_v18  ;;  %v3923_v24 = vld [vmem:[#allocation11 + $0xa4] ss:$16 sps:$4 sm:$0xff]   ;;  %v3938_v30 = vld [vmem:[#allocation11 + $0xc0] ss:$16 sps:$4 sm:$0xff]   ;;  %v3966_v36 = vld [vmem:[#allocation11 + $0x28] ss:$16 sps:$4 sm:$0xff]  }
  0x55   :  { %867 = vmatprep.subr.bf16.mxu0 %v3891_v7  ;;  %v92_v26 = vld [vmem:[#allocation6 + $0x30] sm:$0xff]  ;;  %v3970_v38 = vld [vmem:[#allocation11 + $0x4c] ss:$16 sps:$4 sm:$0xff]   ;;  %v3976_v39 = vld [vmem:[#allocation11 + $0x48] ss:$16 sps:$4 sm:$0xff]   ;;  %v114_v17 = vsub.s32 1, %v109_v51 }
  0x56   :  { %561 = vmatpush1.bf16.msra.mxu1 %v3897_v9  ;;  %v3935_v28 = vld [vmem:[#allocation11 + $0xc4] ss:$16 sps:$4 sm:$0xff]   ;;  %v3356_v29 = vpack.c.bf16 %v93_v27, %v92_v26  ;;  %v3946_v32 = vld [vmem:[#allocation11 + $0xe0] ss:$16 sps:$4 sm:$0xff]   ;;  %v3979_v40 = vld [vmem:[#allocation11 + $0x6c] ss:$16 sps:$4 sm:$0xff]  }
  0x57   :  { %562 = vmatprep.subr.bf16.mxu1 %v3902_v12  ;;  %3052 = vmatmul.mubr.msk.bf16.vlgmr.msra.gmra.mrb[0].mxu0 %vm168_vm0, %v3353_v5  ;;  %v3940_v31 = vld [vmem:[#allocation11 + $0xe4] ss:$16 sps:$4 sm:$0xff]   ;;  %v3989_v41 = vld [vmem:[#allocation11 + $0x68] ss:$16 sps:$4 sm:$0xff]   ;;  %v3992_v42 = vld [vmem:[#allocation11 + $0x8c] ss:$16 sps:$4 sm:$0xff]  }
  0x58   :  { %868 = vmatpush1.bf16.msra.mxu0 %v3889_v6  ;;  %223 = vmatprep.mubr.bf16.mxu0 %v4498_v0  ;;  %v3997_v43 = vld [vmem:[#allocation11 + $0x88] ss:$16 sps:$4 sm:$0xff]   ;;  %v4000_v44 = vld [vmem:[#allocation11 + $0xac] ss:$16 sps:$4 sm:$0xff]   ;;  %v106_v53 = vld [vmem:[%s4494_s3] sm:$0xf] }
  0x59   :  { %3057 = vmatmul.mubr.msk.bf16.gmra.mrb[4].mxu1 %vm168_vm0, %v3354_v13  ;;  %869 = vmatprep.subr.bf16.mxu0 %v3893_v8  ;;  %v4003_v45 = vld [vmem:[#allocation11 + $0xa8] ss:$16 sps:$4 sm:$0xff]   ;;  %v4006_v46 = vld [vmem:[#allocation11 + $0xcc] ss:$16 sps:$4 sm:$0xff]   ;;  %v4040_v55 = vrot.slane %v106_v53, %v118_v52  ;;  %v4046_v58 = vrot.slane %v106_v53, %v122_v54  ;;  %v111_v19 = vrot.slane %v106_v53, %v110_v11 }
  0x5a   :  { %563 = vmatpush1.bf16.msra.mxu1 %v3905_v14  ;;  %306 = vmatprep.mubr.bf16.mxu1 %v4498_v0  ;;  %v4009_v47 = vld [vmem:[#allocation11 + $0xc8] ss:$16 sps:$4 sm:$0xff]   ;;  %v4012_v48 = vld [vmem:[#allocation11 + $0xec] ss:$16 sps:$4 sm:$0xff]   ;;  %v115_v26 = vrot.slane %v106_v53, %v114_v17 }
  0x5b   :  { %564 = vmatprep.subr.bf16.mxu1 %v3908_v15  ;;  %v4015_v49 = vld [vmem:[#allocation11 + $0xe8] ss:$16 sps:$4 sm:$0xff]  }
  0x5c   :  { %870 = vmatpush1.bf16.msra.mxu0 %v3897_v9 }
  0x5d   :  { %871 = vmatprep.subr.bf16.mxu0 %v3902_v12 }
  0x5e   :  { %565 = vmatpush1.bf16.msra.mxu1 %v3910_v16 }
  0x5f   :  { %566 = vmatprep.subr.bf16.mxu1 %v3916_v21  ;;  %3053 = vmatmul.mubr.msk.bf16.gmra.mrb[4].mxu0 %vm168_vm0, %v3354_v13 }
  0x60   :  { %872 = vmatpush1.bf16.msra.mxu0 %v3905_v14  ;;  %233 = vmatprep.mubr.bf16.mxu0 %v4498_v0 }
  0x61   :  { %3058 = vmatmul.mubr.msk.bf16.gmra.mrb[8].mxu1 %vm168_vm0, %v3355_v22  ;;  %873 = vmatprep.subr.bf16.mxu0 %v3908_v15 }
  0x62   :  { %567 = vmatpush1.bf16.msra.mxu1 %v3920_v23  ;;  %316 = vmatprep.mubr.bf16.mxu1 %v4498_v0 }
  0x63   :  { %568 = vmatprep.subr.bf16.mxu1 %v3923_v24 }
  0x64   :  { %874 = vmatpush1.bf16.msra.mxu0 %v3910_v16 }
  0x65   :  { %875 = vmatprep.subr.bf16.mxu0 %v3916_v21 }
  0x66   :  { %569 = vmatpush1.bf16.msra.mxu1 %v3929_v25 }
  0x67   :  { %570 = vmatprep.subr.bf16.mxu1 %v3935_v28  ;;  %3054 = vmatmul.mubr.msk.bf16.gmra.mrb[8].mxu0 %vm168_vm0, %v3355_v22 }
  0x68   :  { %876 = vmatpush1.bf16.msra.mxu0 %v3920_v23  ;;  %243 = vmatprep.mubr.bf16.mxu0 %v4498_v0 }
  0x69   :  { %3059 = vmatmul.mubr.msk.bf16.gmra.mrb[12].mxu1 %vm168_vm0, %v3356_v29  ;;  %877 = vmatprep.subr.bf16.mxu0 %v3923_v24 }
  0x6a   :  { %571 = vmatpush1.bf16.msra.mxu1 %v3938_v30  ;;  %590 = vmatprep.mubr.bf16.mxu1 %v4498_v0 }
  0x6b   :  { %572 = vmatprep.subr.bf16.mxu1 %v3940_v31 }
  0x6c   :  { %878 = vmatpush1.bf16.msra.mxu0 %v3929_v25 }
  0x6d   :  { %879 = vmatprep.subr.bf16.mxu0 %v3935_v28 }
  0x6e   :  { %573 = vmatpush1.bf16.msra.mxu1 %v3946_v32 }
  0x6f   :  { %599 = vmatprep.subr.bf16.mxu1 %v3951_v33  ;;  %3055 = vmatmul.mubr.msk.bf16.gmra.mrb[12].mxu0 %vm168_vm0, %v3356_v29 }
  0x70   :  { %880 = vmatpush1.bf16.msra.mxu0 %v3938_v30  ;;  %899 = vmatprep.mubr.bf16.mxu0 %v4498_v0 }
  0x71   :  { %591 = vmatmul.mubr.bf16.vlgmr.msra.gmra.mrb[16].mxu1 %v3786_v37  ;;  %881 = vmatprep.subr.bf16.mxu0 %v3940_v31 }
  0x72   :  { %600 = vmatpush1.bf16.msra.mxu1 %v3957_v34  ;;  %631 = vmatprep.mubr.bf16.mxu1 %v4498_v0 }
  0x73   :  { %601 = vmatprep.subr.bf16.mxu1 %v3960_v35 }
  0x74   :  { %882 = vmatpush1.bf16.msra.mxu0 %v3946_v32 }
  0x75   :  { %1177 = vmatprep.subr.bf16.mxu0 %v3891_v7 }
  0x76   :  { %602 = vmatpush1.bf16.msra.mxu1 %v3966_v36 }
  0x77   :  { %603 = vmatprep.subr.bf16.mxu1 %v3970_v38 }
  0x7a   :  { %604 = vmatpush1.bf16.msra.mxu1 %v3976_v39 }
  0x7b   :  { %605 = vmatprep.subr.bf16.mxu1 %v3979_v40 }
  0x7e   :  { %606 = vmatpush1.bf16.msra.mxu1 %v3989_v41 }
  0x7f   :  { %607 = vmatprep.subr.bf16.mxu1 %v3992_v42 }
  0x82   :  { %608 = vmatpush1.bf16.msra.mxu1 %v3997_v43 }
  0x83   :  { %609 = vmatprep.subr.bf16.mxu1 %v4000_v44 }
  0x86   :  { %610 = vmatpush1.bf16.msra.mxu1 %v4003_v45 }
  0x87   :  { %611 = vmatprep.subr.bf16.mxu1 %v4006_v46 }
  0x8a   :  { %612 = vmatpush1.bf16.msra.mxu1 %v4009_v47 }
  0x8b   :  { %613 = vmatprep.subr.bf16.mxu1 %v4012_v48 }
  0x8e   :  { %614 = vmatpush1.bf16.msra.mxu1 %v4015_v49 }
  0x8f   :  { %908 = vmatprep.subr.bf16.mxu1 %v3951_v33 }
  0x91   :  { %632 = vmatmul.mubr.bf16.vlgmr.msra.gmra.mrb[20].mxu1 %v3786_v37 }
  0x92   :  { %909 = vmatpush1.bf16.msra.mxu1 %v3957_v34  ;;  %940 = vmatprep.mubr.bf16.mxu1 %v4498_v0 }
  0x93   :  { %910 = vmatprep.subr.bf16.mxu1 %v3960_v35 }
  0x96   :  { %911 = vmatpush1.bf16.msra.mxu1 %v3966_v36 }
  0x97   :  { %912 = vmatprep.subr.bf16.mxu1 %v3970_v38 }
  0x9a   :  { %913 = vmatpush1.bf16.msra.mxu1 %v3976_v39 }
  0x9b   :  { %914 = vmatprep.subr.bf16.mxu1 %v3979_v40 }
  0x9e   :  { %915 = vmatpush1.bf16.msra.mxu1 %v3989_v41 }
  0x9f   :  { %916 = vmatprep.subr.bf16.mxu1 %v3992_v42 }
  0xa2   :  { %917 = vmatpush1.bf16.msra.mxu1 %v3997_v43 }
  0xa3   :  { %918 = vmatprep.subr.bf16.mxu1 %v4000_v44 }
  0xa6   :  { %919 = vmatpush1.bf16.msra.mxu1 %v4003_v45 }
  0xa7   :  { %920 = vmatprep.subr.bf16.mxu1 %v4006_v46 }
  0xaa   :  { %921 = vmatpush1.bf16.msra.mxu1 %v4009_v47 }
  0xab   :  { %922 = vmatprep.subr.bf16.mxu1 %v4012_v48 }
  0xae   :  { %923 = vmatpush1.bf16.msra.mxu1 %v4015_v49 }
  0xaf   :  { %1218 = vmatprep.subr.bf16.mxu1 %v3951_v33 }
 0x124   :  { %v4042_v56 = vpop.f32.mrb[0].mxu1 }
 0x125   :  { %v4044_v57 = vpop.f32.mrb[1].mxu1 }
 0x126   :  { %v292_v59 = vpop.f32.mrb[2].mxu1 }
 0x127   :  { %v4049_v60 = vadd.f32 %v292_v59, %v4040_v55  ;;  %v294_v61 = vpop.f32.mrb[3].mxu1 }
 0x128   :  { %v4052_v62 = vadd.f32 %v294_v61, %v4046_v58 }
 0x12a   :  { %v215_v18 = vpop.f32.mrb[0].mxu0 }
 0x12b   :  { %v217_v20 = vpop.f32.mrb[1].mxu0 }
 0x12c   :  { %v298_v63 = vpop.f32.mrb[4].mxu1  ;;  %v219_v27 = vpop.f32.mrb[2].mxu0 }
 0x12d   :  { %v4055_v1 = vadd.f32 %v298_v63, %v4040_v55  ;;  %v300_v2 = vpop.f32.mrb[5].mxu1  ;;  %v4069_v50 = vadd.f32 %v219_v27, %v111_v19  ;;  %v221_v52 = vpop.f32.mrb[3].mxu0 }
 0x12e   :  { %v4058_v3 = vadd.f32 %v300_v2, %v4046_v58  ;;  %v302_v4 = vpop.f32.mrb[6].mxu1  ;;  %v4074_v61 = vadd.f32 %v221_v52, %v115_v26 }
 0x12f   :  { %v4061_v5 = vadd.f32 %v302_v4, %v4040_v55  ;;  %v304_v10 = vpop.f32.mrb[7].mxu1 }
 0x130   :  { %4500 = vst [vmem:[#allocation19_spill] sm:$0xff] %v4058_v3  ;;  %v4064_v13 = vadd.f32 %v304_v10, %v4046_v58 }
 0x131   :  { %4501 = vst [vmem:[#allocation20_spill] sm:$0xff] %v4061_v5 }
 0x132   :  { %4502 = vst [vmem:[#allocation21_spill] sm:$0xff] %v4064_v13  ;;  %v225_v2 = vpop.f32.mrb[4].mxu0 }
 0x133   :  { %v4082_v4 = vadd.f32 %v225_v2, %v111_v19  ;;  %v227_v10 = vpop.f32.mrb[5].mxu0 }
 0x134   :  { %v308_v22 = vpop.f32.mrb[8].mxu1  ;;  %v4084_v17 = vadd.f32 %v227_v10, %v115_v26 }
 0x135   :  { %v4067_v29 = vadd.f32 %v308_v22, %v4040_v55  ;;  %v310_v37 = vpop.f32.mrb[9].mxu1  ;;  %v229_v22 = vpop.f32.mrb[6].mxu0 }
 0x136   :  { %v4072_v54 = vadd.f32 %v310_v37, %v4046_v58  ;;  %v312_v59 = vpop.f32.mrb[10].mxu1  ;;  %v4089_v52 = vadd.f32 %v229_v22, %v111_v19 }
 0x137   :  { %4503 = vst [vmem:[#allocation22_spill] sm:$0xff] %v4067_v29  ;;  %v4077_v51 = vadd.f32 %v312_v59, %v4040_v55  ;;  %v314_v63 = vpop.f32.mrb[11].mxu1  ;;  %v231_v59 = vpop.f32.mrb[7].mxu0 }
 0x138   :  { %4504 = vst [vmem:[#allocation23_spill] sm:$0xff] %v4072_v54  ;;  %v4080_v53 = vadd.f32 %v314_v63, %v4046_v58  ;;  %4508 = vst [vmem:[#allocation27_spill] sm:$0xff] %v4089_v52  ;;  %v216_v54 = vadd.f32 %v215_v18, %v111_v19 }
 0x139   :  { %4505 = vst [vmem:[#allocation24_spill] sm:$0xff] %v4077_v51 }
 0x13a   :  { %4506 = vst [vmem:[#allocation25_spill] sm:$0xff] %v4080_v53  ;;  %v4094_v53 = vadd.f32 %v231_v59, %v115_v26 }
 0x13c   :  { %v318_v11 = vpop.f32.mrb[12].mxu1  ;;  %4510 = vst [vmem:[#allocation29_spill] sm:$0xff] %v4094_v53 }
 0x13d   :  { %v4087_v27 = vadd.f32 %v318_v11, %v4040_v55  ;;  %v320_v37 = vpop.f32.mrb[13].mxu1  ;;  %v218_v11 = vadd.f32 %v217_v20, %v115_v26 }
 0x13e   :  { %v4092_v0 = vadd.f32 %v320_v37, %v4046_v58  ;;  %v322_v63 = vpop.f32.mrb[14].mxu1 }
 0x13f   :  { %4507 = vst [vmem:[#allocation26_spill] sm:$0xff] %v4087_v27  ;;  %v4097_v2 = vadd.f32 %v322_v63, %v4040_v55  ;;  %v324_v51 = vpop.f32.mrb[15].mxu1  ;;  %v235_v27 = vpop.f32.mrb[8].mxu0 }
 0x140   :  { %4509 = vst [vmem:[#allocation28_spill] sm:$0xff] %v4092_v0  ;;  %v4100_v10 = vadd.f32 %v324_v51, %v4046_v58  ;;  %v4102_v29 = vadd.f32 %v235_v27, %v111_v19  ;;  %v237_v22 = vpop.f32.mrb[9].mxu0 }
 0x141   :  { %4511 = vst [vmem:[#allocation30_spill] sm:$0xff] %v4097_v2  ;;  %v4104_v5 = vadd.f32 %v237_v22, %v115_v26  ;;  %v239_v37 = vpop.f32.mrb[10].mxu0 }
 0x142   :  { %4512 = vst [vmem:[#allocation31_spill] sm:$0xff] %v4100_v10  ;;  %4513 = vst [vmem:[#allocation32_spill] sm:$0xff] %v4102_v29  ;;  %v4106_v53 = vadd.f32 %v239_v37, %v111_v19  ;;  %v241_v63 = vpop.f32.mrb[11].mxu0 }
 0x143   :  { %4514 = vst [vmem:[#allocation33_spill] sm:$0xff] %v4104_v5  ;;  %v4108_v3 = vadd.f32 %v241_v63, %v115_v26  ;;  %v245_v18 = vpop.f32.mrb[12].mxu0  ;;  %v289_v63 = vadd.f32 %v4042_v56, %v4040_v55 }
 0x144   :  { %v592_v13 = vpop.f32.mrb[16].mxu1  ;;  %v4110_v20 = vadd.f32 %v245_v18, %v111_v19  ;;  %v247_v27 = vpop.f32.mrb[13].mxu0  ;;  %v291_v18 = vadd.f32 %v4044_v57, %v4046_v58 }
 0x145   :  { %v640_v0 = vadd.f32 %v592_v13, %v216_v54  ;;  %v594_v59 = vpop.f32.mrb[17].mxu1  ;;  %v4112_v10 = vadd.f32 %v247_v27, %v115_v26  ;;  %v249_v29 = vpop.f32.mrb[14].mxu0 }
 0x146   :  { %v641_v2 = vadd.f32 %v594_v59, %v218_v11  ;;  %v596_v52 = vpop.f32.mrb[18].mxu1  ;;  %v4114_v22 = vadd.f32 %v249_v29, %v111_v19  ;;  %v251_v5 = vpop.f32.mrb[15].mxu0 }
 0x147   :  { %v597_v51 = vpop.f32.mrb[19].mxu1  ;;  %v4116_v13 = vadd.f32 %v251_v5, %v115_v26  ;;  %v3092_v37 = vmul.f32 -1.442695, %v640_v0 }
 0x148   :  { %4515 = vst [vmem:[#allocation34_spill] sm:$0xff] %v4114_v22  ;;  %v3093_v54 = vmul.f32 -1.442695, %v641_v2 }
 0x149   :  { %4516 = vst [vmem:[#allocation35_spill] sm:$0xff] %v4116_v13 }
 0x14a   :  { %3529 = vpow2.f32 %v3093_v54 }
 0x14b   :  { %3531 = vpow2.f32 %v3092_v37 }
 0x154   :  { %v3530_v52 = vpop.eup %3529 }
 0x155   :  { %v3532_v11 = vpop.eup %3531  ;;  %v654_v59 = vadd.f32 1.0, %v3530_v52 }
 0x156   :  { %v653_v51 = vadd.f32 1.0, %v3532_v11 }
 0x157   :  { %3533 = vrcp.f32 %v654_v59 }
 0x158   :  { %3535 = vrcp.f32 %v653_v51 }
 0x161   :  { %v3534_v54 = vpop.eup %3533 }
 0x162   :  { %v3536_v37 = vpop.eup %3535  ;;  %v663_v55 = vmul.f32 0.0, %v3534_v54 }
 0x164   :  { %v633_v27 = vpop.f32.mrb[20].mxu1 }
 0x165   :  { %v642_v19 = vadd.f32 %v633_v27, %v289_v63  ;;  %v635_v29 = vpop.f32.mrb[21].mxu1 }
 0x166   :  { %v643_v5 = vadd.f32 %v635_v29, %v291_v18  ;;  %v637_v26 = vpop.f32.mrb[22].mxu1 }
 0x167   :  { %v3094_v0 = vmul.f32 -1.442695, %v642_v19  ;;  %v638_v2 = vpop.f32.mrb[23].mxu1 }
 0x168   :  { %3537 = vtanh.f32 %v643_v5 }
 0x169   :  { %3539 = vpow2.f32 %v3094_v0 }
 0x172   :  { %v3538_v52 = vpop.eup %3537 }
 0x173   :  { %v3540_v13 = vpop.eup %3539  ;;  %v664_v56 = vmul.f32 %v3538_v52, %v3536_v37 }
 0x174   :  { %v655_v11 = vadd.f32 1.0, %v3540_v13  ;;  %v4517_v13 = vmov 0  }
 0x175   :  { %v4122_v22 = vadd.f32 %v664_v56, %v663_v55 }
 0x176   :  { %3541 = vrcp.f32 %v655_v11 }
 0x177   :  { %3543 = vtanh.f32 %v4122_v22 }
 0x180   :  { %v3542_v57 = vpop.eup %3541 }
 0x181   :  { %v3544_v58 = vpop.eup %3543 }
 0x182   :  { %v4125_v59 = vmul.f32 %v3544_v58, %v3542_v57 }
 0x184   :  { %v674_v63 = vpack.c.bf16 %v4125_v59, %v4125_v59 }
 0x186   :  { %900 = vmatmul.mubr.bf16.vlgmr.msra.gmra.mrb[16].mxu0 %v674_v63  ;;  %941 = vmatmul.mubr.bf16.vlgmr.msra.gmra.mrb[24].mxu1 %v674_v63 }
 0x187   :  { %1178 = vmatpush1.bf16.msra.mxu0 %v3889_v6  ;;  %1219 = vmatpush1.bf16.msra.mxu1 %v3957_v34 }
 0x188   :  { %1179 = vmatprep.subr.bf16.mxu0 %v3893_v8  ;;  %1220 = vmatprep.subr.bf16.mxu1 %v3960_v35 }
 0x189   :  { %1209 = vmatprep.mubr.bf16.mxu0 %v4517_v13  ;;  %1250 = vmatprep.mubr.bf16.mxu1 %v4517_v13 }
 0x18b   :  { %1180 = vmatpush1.bf16.msra.mxu0 %v3897_v9  ;;  %1221 = vmatpush1.bf16.msra.mxu1 %v3966_v36 }
 0x18c   :  { %1181 = vmatprep.subr.bf16.mxu0 %v3902_v12  ;;  %1222 = vmatprep.subr.bf16.mxu1 %v3970_v38 }
 0x18f   :  { %1182 = vmatpush1.bf16.msra.mxu0 %v3905_v14  ;;  %1223 = vmatpush1.bf16.msra.mxu1 %v3976_v39 }
 0x190   :  { %1183 = vmatprep.subr.bf16.mxu0 %v3908_v15  ;;  %1224 = vmatprep.subr.bf16.mxu1 %v3979_v40 }
 0x193   :  { %1184 = vmatpush1.bf16.msra.mxu0 %v3910_v16  ;;  %1225 = vmatpush1.bf16.msra.mxu1 %v3989_v41 }
 0x194   :  { %1185 = vmatprep.subr.bf16.mxu0 %v3916_v21  ;;  %1226 = vmatprep.subr.bf16.mxu1 %v3992_v42 }
 0x197   :  { %1186 = vmatpush1.bf16.msra.mxu0 %v3920_v23  ;;  %1227 = vmatpush1.bf16.msra.mxu1 %v3997_v43 }
 0x198   :  { %1187 = vmatprep.subr.bf16.mxu0 %v3923_v24  ;;  %1228 = vmatprep.subr.bf16.mxu1 %v4000_v44 }
 0x19b   :  { %1188 = vmatpush1.bf16.msra.mxu0 %v3929_v25  ;;  %1229 = vmatpush1.bf16.msra.mxu1 %v4003_v45 }
 0x19c   :  { %1189 = vmatprep.subr.bf16.mxu0 %v3935_v28  ;;  %1230 = vmatprep.subr.bf16.mxu1 %v4006_v46 }
 0x19f   :  { %1190 = vmatpush1.bf16.msra.mxu0 %v3938_v30  ;;  %1231 = vmatpush1.bf16.msra.mxu1 %v4009_v47 }
 0x1a0   :  { %1191 = vmatprep.subr.bf16.mxu0 %v3940_v31  ;;  %1232 = vmatprep.subr.bf16.mxu1 %v4012_v48 }
 0x1a3   :  { %1192 = vmatpush1.bf16.msra.mxu0 %v3946_v32  ;;  %1233 = vmatpush1.bf16.msra.mxu1 %v4015_v49 }
 0x1a4   :  { %1487 = vmatprep.subr.bf16.mxu0 %v3891_v7  ;;  %1528 = vmatprep.subr.bf16.mxu1 %v3951_v33 }
 0x259   :  { %v901_v24 = vpop.f32.mrb[16].mxu0  ;;  %v942_v25 = vpop.f32.mrb[24].mxu1 }
 0x25a   :  { %v949_v28 = vadd.f32 %v901_v24, %v4069_v50  ;;  %v951_v30 = vadd.f32 %v942_v25, %v4049_v60  ;;  %v903_v51 = vpop.f32.mrb[17].mxu0  ;;  %v944_v18 = vpop.f32.mrb[25].mxu1 }
 0x25b   :  { %v950_v31 = vadd.f32 %v903_v51, %v4074_v61  ;;  %v952_v27 = vadd.f32 %v944_v18, %v4052_v62  ;;  %v905_v19 = vpop.f32.mrb[18].mxu0  ;;  %v946_v32 = vpop.f32.mrb[26].mxu1 }
 0x25c   :  { %v3127_v29 = vmul.f32 -1.442695, %v949_v28  ;;  %v906_v5 = vpop.f32.mrb[19].mxu0  ;;  %v947_v26 = vpop.f32.mrb[27].mxu1  ;;  %v3129_v33 = vmul.f32 -1.442695, %v951_v30 }
 0x25d   :  { %v3128_v7 = vmul.f32 -1.442695, %v950_v31  ;;  %v4233_v5 = vld [vmem:[#allocation11 + $0x4] ss:$16 sps:$4 sm:$0xff]   ;;  %v4235_v26 = vld [vmem:[#allocation11 + $0xc] ss:$16 sps:$4 sm:$0xff]  }
 0x25e   :  { %3545 = vpow2.f32 %v3127_v29 }
 0x25f   :  { %3547 = vpow2.f32 %v3128_v7  ;;  %v4237_v7 = vld [vmem:[#allocation11] ss:$16 sps:$4 sm:$0xff]  }
 0x260   :  { %3549 = vtanh.f32 %v952_v27 }
 0x261   :  { %3551 = vpow2.f32 %v3129_v33  ;;  %v4239_v33 = vld [vmem:[#allocation11 + $0x8] ss:$16 sps:$4 sm:$0xff]  }
 0x268   :  { %v3546_v0 = vpop.eup %3545 }
 0x269   :  { %v962_v2 = vadd.f32 1.0, %v3546_v0  ;;  %v3548_v50 = vpop.eup %3547  ;;  %v4245_v0 = vld [vmem:[#allocation11 + $0x24] ss:$16 sps:$4 sm:$0xff]  }
 0x26a   :  { %v963_v60 = vadd.f32 1.0, %v3548_v50  ;;  %v3550_v61 = vpop.eup %3549  ;;  %v4249_v50 = vld [vmem:[#allocation11 + $0x20] ss:$16 sps:$4 sm:$0xff]  }
 0x26b   :  { %3553 = vrcp.f32 %v962_v2  ;;  %v3552_v54 = vpop.eup %3551  ;;  %v4247_v2 = vld [vmem:[#allocation11 + $0x2c] ss:$16 sps:$4 sm:$0xff]  }
 0x26c   :  { %3555 = vrcp.f32 %v963_v60  ;;  %v964_v55 = vadd.f32 1.0, %v3552_v54  ;;  %v4251_v60 = vld [vmem:[#allocation11 + $0x28] ss:$16 sps:$4 sm:$0xff]   ;;  %v4259_v54 = vld [vmem:[#allocation11 + $0x4c] ss:$16 sps:$4 sm:$0xff]  }
 0x26e   :  { %3557 = vrcp.f32 %v964_v55  ;;  %v4271_v55 = vld [vmem:[#allocation11 + $0x6c] ss:$16 sps:$4 sm:$0xff]  }
 0x275   :  { %v3554_v62 = vpop.eup %3553 }
 0x276   :  { %v973_v37 = vmul.f32 %v3554_v62, %v3550_v61  ;;  %v3556_v52 = vpop.eup %3555  ;;  %v4257_v61 = vld [vmem:[#allocation11 + $0x44] ss:$16 sps:$4 sm:$0xff]   ;;  %v4261_v62 = vld [vmem:[#allocation11 + $0x40] ss:$16 sps:$4 sm:$0xff]  }
 0x277   :  { %v972_v56 = vmul.f32 %v3556_v52, %v4122_v22  ;;  %v4269_v52 = vld [vmem:[#allocation11 + $0x64] ss:$16 sps:$4 sm:$0xff]  }
 0x278   :  { %v3558_v57 = vpop.eup %3557 }
 0x279   :  { %v4168_v11 = vadd.f32 %v973_v37, %v972_v56  ;;  %v4263_v37 = vld [vmem:[#allocation11 + $0x48] ss:$16 sps:$4 sm:$0xff]   ;;  %v4273_v56 = vld [vmem:[#allocation11 + $0x60] ss:$16 sps:$4 sm:$0xff]  }
 0x27b   :  { %3559 = vtanh.f32 %v4168_v11 }
 0x285   :  { %v3560_v58 = vpop.eup %3559 }
 0x286   :  { %v4171_v63 = vmul.f32 %v3560_v58, %v3558_v57  ;;  %v4281_v57 = vld [vmem:[#allocation11 + $0x84] ss:$16 sps:$4 sm:$0xff]   ;;  %v4283_v58 = vld [vmem:[#allocation11 + $0x8c] ss:$16 sps:$4 sm:$0xff]  }
 0x288   :  { %v984_v24 = vpack.c.bf16 %v4171_v63, %v4171_v63 }
 0x28a   :  { %1210 = vmatmul.mubr.bf16.vlgmr.msra.gmra.mrb[20].mxu0 %v984_v24  ;;  %1251 = vmatmul.mubr.bf16.vlgmr.msra.gmra.mrb[28].mxu1 %v984_v24  ;;  %v4285_v24 = vld [vmem:[#allocation11 + $0x80] ss:$16 sps:$4 sm:$0xff]  }
 0x28b   :  { %1488 = vmatpush1.bf16.msra.mxu0 %v3889_v6  ;;  %1529 = vmatpush1.bf16.msra.mxu1 %v3957_v34  ;;  %v4201_v6 = vld [vmem:[#allocation11 + $0xa0] ss:$16 sps:$4 sm:$0xff]  }
 0x28c   :  { %1489 = vmatprep.subr.bf16.mxu0 %v3893_v8  ;;  %1530 = vmatprep.subr.bf16.mxu1 %v3960_v35  ;;  %v4203_v8 = vld [vmem:[#allocation11 + $0xa4] ss:$16 sps:$4 sm:$0xff]  }
 0x28d   :  { %1519 = vmatprep.mubr.bf16.mxu0 %v4517_v13  ;;  %1560 = vmatprep.mubr.bf16.mxu1 %v4517_v13 }
 0x28f   :  { %1490 = vmatpush1.bf16.msra.mxu0 %v3897_v9  ;;  %1531 = vmatpush1.bf16.msra.mxu1 %v3966_v36  ;;  %v4205_v9 = vld [vmem:[#allocation11 + $0xc4] ss:$16 sps:$4 sm:$0xff]  }
 0x290   :  { %1491 = vmatprep.subr.bf16.mxu0 %v3902_v12  ;;  %1532 = vmatprep.subr.bf16.mxu1 %v3970_v38  ;;  %v4209_v12 = vld [vmem:[#allocation11 + $0xc0] ss:$16 sps:$4 sm:$0xff]  }
 0x293   :  { %1492 = vmatpush1.bf16.msra.mxu0 %v3905_v14  ;;  %1533 = vmatpush1.bf16.msra.mxu1 %v3976_v39  ;;  %v4212_v14 = vld [vmem:[#allocation11 + $0xe4] ss:$16 sps:$4 sm:$0xff]  }
 0x294   :  { %1493 = vmatprep.subr.bf16.mxu0 %v3908_v15  ;;  %1534 = vmatprep.subr.bf16.mxu1 %v3979_v40  ;;  %v4215_v15 = vld [vmem:[#allocation11 + $0xe0] ss:$16 sps:$4 sm:$0xff]  }
 0x295   :  { %v4518_v39 = vld [vmem:[#allocation19_spill] sm:$0xff] }
 0x297   :  { %1494 = vmatpush1.bf16.msra.mxu0 %v3910_v16  ;;  %1535 = vmatpush1.bf16.msra.mxu1 %v3989_v41 }
 0x298   :  { %1495 = vmatprep.subr.bf16.mxu0 %v3916_v21  ;;  %1536 = vmatprep.subr.bf16.mxu1 %v3992_v42 }
 0x29b   :  { %1496 = vmatpush1.bf16.msra.mxu0 %v3920_v23  ;;  %1537 = vmatpush1.bf16.msra.mxu1 %v3997_v43 }
 0x29c   :  { %1538 = vmatprep.subr.bf16.mxu1 %v4000_v44  ;;  %1497 = vmatprep.subr.bf16.mxu0 %v4203_v8 }
 0x29f   :  { %1539 = vmatpush1.bf16.msra.mxu1 %v4003_v45  ;;  %1498 = vmatpush1.bf16.msra.mxu0 %v4201_v6 }
 0x2a0   :  { %1540 = vmatprep.subr.bf16.mxu1 %v4006_v46  ;;  %1499 = vmatprep.subr.bf16.mxu0 %v4205_v9 }
 0x2a3   :  { %1541 = vmatpush1.bf16.msra.mxu1 %v4009_v47  ;;  %1500 = vmatpush1.bf16.msra.mxu0 %v4209_v12 }
 0x2a4   :  { %1542 = vmatprep.subr.bf16.mxu1 %v4012_v48  ;;  %1501 = vmatprep.subr.bf16.mxu0 %v4212_v14 }
 0x2a7   :  { %1543 = vmatpush1.bf16.msra.mxu1 %v4015_v49  ;;  %1502 = vmatpush1.bf16.msra.mxu0 %v4215_v15 }
 0x2a8   :  { %1797 = vmatprep.subr.bf16.mxu0 %v4233_v5  ;;  %1838 = vmatprep.subr.bf16.mxu1 %v4235_v26 }
 0x35d   :  { %v1211_v16 = vpop.f32.mrb[20].mxu0  ;;  %v1252_v21 = vpop.f32.mrb[28].mxu1 }
 0x35e   :  { %v1259_v23 = vadd.f32 %v1211_v16, %v4082_v4  ;;  %v1261_v34 = vadd.f32 %v1252_v21, %v4055_v1  ;;  %v1213_v35 = vpop.f32.mrb[21].mxu0  ;;  %v1254_v36 = vpop.f32.mrb[29].mxu1  ;;  %v4287_v16 = vld [vmem:[#allocation11 + $0x88] ss:$16 sps:$4 sm:$0xff]  }
 0x35f   :  { %v1260_v38 = vadd.f32 %v1213_v35, %v4084_v17  ;;  %v1262_v40 = vadd.f32 %v1254_v36, %v4518_v39  ;;  %v1215_v41 = vpop.f32.mrb[22].mxu0  ;;  %v1256_v42 = vpop.f32.mrb[30].mxu1  ;;  %v4293_v21 = vld [vmem:[#allocation11 + $0xa8] ss:$16 sps:$4 sm:$0xff]   ;;  %v4307_v36 = vld [vmem:[#allocation11 + $0xec] ss:$16 sps:$4 sm:$0xff]  }
 0x360   :  { %v3162_v43 = vmul.f32 -1.442695, %v1259_v23  ;;  %v1216_v44 = vpop.f32.mrb[23].mxu0  ;;  %v1257_v45 = vpop.f32.mrb[31].mxu1  ;;  %v3164_v47 = vmul.f32 -1.442695, %v1261_v34 }
 0x361   :  { %v3163_v46 = vmul.f32 -1.442695, %v1260_v38  ;;  %v4295_v23 = vld [vmem:[#allocation11 + $0xac] ss:$16 sps:$4 sm:$0xff]   ;;  %v4303_v35 = vld [vmem:[#allocation11 + $0xc8] ss:$16 sps:$4 sm:$0xff]  }
 0x362   :  { %3561 = vpow2.f32 %v3162_v43  ;;  %v4298_v34 = vld [vmem:[#allocation11 + $0xcc] ss:$16 sps:$4 sm:$0xff]   ;;  %v4311_v38 = vld [vmem:[#allocation11 + $0xe8] ss:$16 sps:$4 sm:$0xff]   ;;  %v4519_v41 = vld [vmem:[#allocation27_spill] sm:$0xff] }
 0x363   :  { %3563 = vpow2.f32 %v3163_v46  ;;  %v4520_v43 = vld [vmem:[#allocation20_spill] sm:$0xff] }
 0x364   :  { %3565 = vtanh.f32 %v1262_v40 }
 0x365   :  { %3567 = vpow2.f32 %v3164_v47  ;;  %v4521_v47 = vld [vmem:[#allocation29_spill] sm:$0xff] }
 0x36c   :  { %v3562_v48 = vpop.eup %3561 }
 0x36d   :  { %v1272_v49 = vadd.f32 1.0, %v3562_v48  ;;  %v3564_v4 = vpop.eup %3563 }
 0x36e   :  { %v1273_v1 = vadd.f32 1.0, %v3564_v4  ;;  %v3566_v17 = vpop.eup %3565 }
 0x36f   :  { %3569 = vrcp.f32 %v1272_v49  ;;  %v3568_v22 = vpop.eup %3567  ;;  %v4522_v49 = vld [vmem:[#allocation21_spill] sm:$0xff] }
 0x370   :  { %3571 = vrcp.f32 %v1273_v1  ;;  %v1274_v51 = vadd.f32 1.0, %v3568_v22 }
 0x372   :  { %3573 = vrcp.f32 %v1274_v51 }
 0x379   :  { %v3570_v25 = vpop.eup %3569 }
 0x37a   :  { %v1283_v28 = vmul.f32 %v3570_v25, %v3566_v17  ;;  %v3572_v30 = vpop.eup %3571 }
 0x37b   :  { %v1282_v18 = vmul.f32 %v3572_v30, %v4168_v11  ;;  %v4275_v11 = vld [vmem:[#allocation11 + $0x68] ss:$16 sps:$4 sm:$0xff]  }
 0x37c   :  { %v3574_v27 = vpop.eup %3573 }
 0x37d   :  { %v4224_v31 = vadd.f32 %v1283_v28, %v1282_v18 }
 0x37f   :  { %3575 = vtanh.f32 %v4224_v31 }
 0x389   :  { %v3576_v19 = vpop.eup %3575 }
 0x38a   :  { %v4227_v32 = vmul.f32 %v3576_v19, %v3574_v27 }
 0x38c   :  { %v1294_v29 = vpack.c.bf16 %v4227_v32, %v4227_v32 }
 0x38e   :  { %1520 = vmatmul.mubr.bf16.vlgmr.msra.gmra.mrb[24].mxu0 %v1294_v29  ;;  %1561 = vmatmul.mubr.bf16.vlgmr.msra.gmra.mrb[32].mxu1 %v1294_v29 }
 0x38f   :  { %1829 = vmatprep.mubr.bf16.mxu0 %v4517_v13  ;;  %1870 = vmatprep.mubr.bf16.mxu1 %v4517_v13 }
 0x390   :  { %1798 = vmatpush1.bf16.msra.mxu0 %v4237_v7  ;;  %1839 = vmatpush1.bf16.msra.mxu1 %v4239_v33 }
 0x391   :  { %1799 = vmatprep.subr.bf16.mxu0 %v4245_v0  ;;  %1840 = vmatprep.subr.bf16.mxu1 %v4247_v2 }
 0x394   :  { %1800 = vmatpush1.bf16.msra.mxu0 %v4249_v50  ;;  %1841 = vmatpush1.bf16.msra.mxu1 %v4251_v60 }
 0x395   :  { %1801 = vmatprep.subr.bf16.mxu0 %v4257_v61  ;;  %1842 = vmatprep.subr.bf16.mxu1 %v4259_v54 }
 0x398   :  { %1802 = vmatpush1.bf16.msra.mxu0 %v4261_v62  ;;  %1843 = vmatpush1.bf16.msra.mxu1 %v4263_v37 }
 0x399   :  { %1803 = vmatprep.subr.bf16.mxu0 %v4269_v52  ;;  %1844 = vmatprep.subr.bf16.mxu1 %v4271_v55 }
 0x39c   :  { %1804 = vmatpush1.bf16.msra.mxu0 %v4273_v56  ;;  %1845 = vmatpush1.bf16.msra.mxu1 %v4275_v11 }
 0x39d   :  { %1805 = vmatprep.subr.bf16.mxu0 %v4281_v57  ;;  %1846 = vmatprep.subr.bf16.mxu1 %v4283_v58 }
 0x3a0   :  { %1806 = vmatpush1.bf16.msra.mxu0 %v4285_v24  ;;  %1847 = vmatpush1.bf16.msra.mxu1 %v4287_v16 }
 0x3a1   :  { %1807 = vmatprep.subr.bf16.mxu0 %v4203_v8  ;;  %1848 = vmatprep.subr.bf16.mxu1 %v4295_v23 }
 0x3a4   :  { %1808 = vmatpush1.bf16.msra.mxu0 %v4201_v6  ;;  %1849 = vmatpush1.bf16.msra.mxu1 %v4293_v21 }
 0x3a5   :  { %1809 = vmatprep.subr.bf16.mxu0 %v4205_v9  ;;  %1850 = vmatprep.subr.bf16.mxu1 %v4298_v34 }
 0x3a8   :  { %1810 = vmatpush1.bf16.msra.mxu0 %v4209_v12  ;;  %1851 = vmatpush1.bf16.msra.mxu1 %v4303_v35 }
 0x3a9   :  { %1811 = vmatprep.subr.bf16.mxu0 %v4212_v14  ;;  %1852 = vmatprep.subr.bf16.mxu1 %v4307_v36 }
 0x3ac   :  { %1812 = vmatpush1.bf16.msra.mxu0 %v4215_v15  ;;  %1853 = vmatpush1.bf16.msra.mxu1 %v4311_v38 }
 0x3ad   :  { %2107 = vmatprep.subr.bf16.mxu0 %v4233_v5  ;;  %2148 = vmatprep.subr.bf16.mxu1 %v4235_v26 }
 0x461   :  { %v1521_v39 = vpop.f32.mrb[24].mxu0  ;;  %v1562_v40 = vpop.f32.mrb[32].mxu1 }
 0x462   :  { %v1569_v42 = vadd.f32 %v1521_v39, %v4519_v41  ;;  %v1571_v44 = vadd.f32 %v1562_v40, %v4520_v43  ;;  %v1523_v45 = vpop.f32.mrb[25].mxu0  ;;  %v1564_v46 = vpop.f32.mrb[33].mxu1 }
 0x463   :  { %v1570_v48 = vadd.f32 %v1523_v45, %v4521_v47  ;;  %v1572_v4 = vadd.f32 %v1564_v46, %v4522_v49  ;;  %v1525_v1 = vpop.f32.mrb[26].mxu0  ;;  %v1566_v17 = vpop.f32.mrb[34].mxu1 }
 0x464   :  { %v3197_v22 = vmul.f32 -1.442695, %v1569_v42  ;;  %v1526_v25 = vpop.f32.mrb[27].mxu0  ;;  %v1567_v28 = vpop.f32.mrb[35].mxu1  ;;  %v3199_v51 = vmul.f32 -1.442695, %v1571_v44 }
 0x465   :  { %v3198_v30 = vmul.f32 -1.442695, %v1570_v48  ;;  %v4523_v17 = vld [vmem:[#allocation32_spill] sm:$0xff]  ;;  %v4524_v25 = vld [vmem:[#allocation22_spill] sm:$0xff] }
 0x466   :  { %3577 = vpow2.f32 %v3197_v22 }
 0x467   :  { %3579 = vpow2.f32 %v3198_v30 }
 0x468   :  { %3581 = vtanh.f32 %v1572_v4 }
 0x469   :  { %3583 = vpow2.f32 %v3199_v51 }
 0x470   :  { %v3578_v18 = vpop.eup %3577 }
 0x471   :  { %v1582_v27 = vadd.f32 1.0, %v3578_v18  ;;  %v3580_v19 = vpop.eup %3579  ;;  %v4525_v18 = vld [vmem:[#allocation33_spill] sm:$0xff] }
 0x472   :  { %v1583_v29 = vadd.f32 1.0, %v3580_v19  ;;  %v3582_v39 = vpop.eup %3581  ;;  %v4526_v19 = vld [vmem:[#allocation23_spill] sm:$0xff] }
 0x473   :  { %3585 = vrcp.f32 %v1582_v27  ;;  %v3584_v40 = vpop.eup %3583 }
 0x474   :  { %3587 = vrcp.f32 %v1583_v29  ;;  %v1584_v42 = vadd.f32 1.0, %v3584_v40 }
 0x476   :  { %3589 = vrcp.f32 %v1584_v42 }
 0x47d   :  { %v3586_v41 = vpop.eup %3585 }
 0x47e   :  { %v1593_v43 = vmul.f32 %v3586_v41, %v3582_v39  ;;  %v3588_v45 = vpop.eup %3587 }
 0x47f   :  { %v1592_v46 = vmul.f32 %v3588_v45, %v4224_v31 }
 0x480   :  { %v3590_v44 = vpop.eup %3589 }
 0x481   :  { %v4324_v47 = vadd.f32 %v1593_v43, %v1592_v46 }
 0x483   :  { %3591 = vtanh.f32 %v4324_v47 }
 0x48d   :  { %v3592_v48 = vpop.eup %3591 }
 0x48e   :  { %v4327_v49 = vmul.f32 %v3592_v48, %v3590_v44 }
 0x490   :  { %v1604_v4 = vpack.c.bf16 %v4327_v49, %v4327_v49 }
 0x492   :  { %1830 = vmatmul.mubr.bf16.vlgmr.msra.gmra.mrb[28].mxu0 %v1604_v4  ;;  %1871 = vmatmul.mubr.bf16.vlgmr.msra.gmra.mrb[36].mxu1 %v1604_v4 }
 0x493   :  { %2108 = vmatpush1.bf16.msra.mxu0 %v4237_v7  ;;  %2149 = vmatpush1.bf16.msra.mxu1 %v4239_v33 }
 0x494   :  { %2109 = vmatprep.subr.bf16.mxu0 %v4245_v0  ;;  %2150 = vmatprep.subr.bf16.mxu1 %v4247_v2 }
 0x495   :  { %2139 = vmatprep.mubr.bf16.mxu0 %v4517_v13  ;;  %2180 = vmatprep.mubr.bf16.mxu1 %v4517_v13 }
 0x497   :  { %2110 = vmatpush1.bf16.msra.mxu0 %v4249_v50  ;;  %2151 = vmatpush1.bf16.msra.mxu1 %v4251_v60 }
 0x498   :  { %2111 = vmatprep.subr.bf16.mxu0 %v4257_v61  ;;  %2152 = vmatprep.subr.bf16.mxu1 %v4259_v54 }
 0x49b   :  { %2112 = vmatpush1.bf16.msra.mxu0 %v4261_v62  ;;  %2153 = vmatpush1.bf16.msra.mxu1 %v4263_v37 }
 0x49c   :  { %2113 = vmatprep.subr.bf16.mxu0 %v4269_v52  ;;  %2154 = vmatprep.subr.bf16.mxu1 %v4271_v55 }
 0x49f   :  { %2114 = vmatpush1.bf16.msra.mxu0 %v4273_v56  ;;  %2155 = vmatpush1.bf16.msra.mxu1 %v4275_v11 }
 0x4a0   :  { %2115 = vmatprep.subr.bf16.mxu0 %v4281_v57  ;;  %2156 = vmatprep.subr.bf16.mxu1 %v4283_v58 }
 0x4a3   :  { %2116 = vmatpush1.bf16.msra.mxu0 %v4285_v24  ;;  %2157 = vmatpush1.bf16.msra.mxu1 %v4287_v16 }
 0x4a4   :  { %2117 = vmatprep.subr.bf16.mxu0 %v4203_v8  ;;  %2158 = vmatprep.subr.bf16.mxu1 %v4295_v23 }
 0x4a7   :  { %2118 = vmatpush1.bf16.msra.mxu0 %v4201_v6  ;;  %2159 = vmatpush1.bf16.msra.mxu1 %v4293_v21 }
 0x4a8   :  { %2119 = vmatprep.subr.bf16.mxu0 %v4205_v9  ;;  %2160 = vmatprep.subr.bf16.mxu1 %v4298_v34 }
 0x4ab   :  { %2120 = vmatpush1.bf16.msra.mxu0 %v4209_v12  ;;  %2161 = vmatpush1.bf16.msra.mxu1 %v4303_v35 }
 0x4ac   :  { %2121 = vmatprep.subr.bf16.mxu0 %v4212_v14  ;;  %2162 = vmatprep.subr.bf16.mxu1 %v4307_v36 }
 0x4af   :  { %2122 = vmatpush1.bf16.msra.mxu0 %v4215_v15  ;;  %2163 = vmatpush1.bf16.msra.mxu1 %v4311_v38 }
 0x4b0   :  { %2417 = vmatprep.subr.bf16.mxu0 %v4233_v5  ;;  %2458 = vmatprep.subr.bf16.mxu1 %v4235_v26 }
 0x565   :  { %v1831_v31 = vpop.f32.mrb[28].mxu0  ;;  %v1872_v1 = vpop.f32.mrb[36].mxu1 }
 0x566   :  { %v1879_v22 = vadd.f32 %v1831_v31, %v4523_v17  ;;  %v1881_v28 = vadd.f32 %v1872_v1, %v4524_v25  ;;  %v1833_v30 = vpop.f32.mrb[29].mxu0  ;;  %v1874_v51 = vpop.f32.mrb[37].mxu1 }
 0x567   :  { %v1880_v27 = vadd.f32 %v1833_v30, %v4525_v18  ;;  %v1882_v29 = vadd.f32 %v1874_v51, %v4526_v19  ;;  %v1835_v39 = vpop.f32.mrb[30].mxu0  ;;  %v1876_v40 = vpop.f32.mrb[38].mxu1 }
 0x568   :  { %v3232_v41 = vmul.f32 -1.442695, %v1879_v22  ;;  %v1836_v43 = vpop.f32.mrb[31].mxu0  ;;  %v1877_v45 = vpop.f32.mrb[39].mxu1  ;;  %v3234_v46 = vmul.f32 -1.442695, %v1881_v28 }
 0x569   :  { %v3233_v42 = vmul.f32 -1.442695, %v1880_v27  ;;  %v4528_v43 = vld [vmem:[#allocation25_spill] sm:$0xff] }
 0x56a   :  { %3593 = vpow2.f32 %v3232_v41 }
 0x56b   :  { %3595 = vpow2.f32 %v3233_v42 }
 0x56c   :  { %3597 = vtanh.f32 %v1882_v29 }
 0x56d   :  { %3599 = vpow2.f32 %v3234_v46 }
 0x574   :  { %v3594_v44 = vpop.eup %3593 }
 0x575   :  { %v1892_v48 = vadd.f32 1.0, %v3594_v44  ;;  %v3596_v4 = vpop.eup %3595 }
 0x576   :  { %v1893_v31 = vadd.f32 1.0, %v3596_v4  ;;  %v3598_v1 = vpop.eup %3597 }
 0x577   :  { %3601 = vrcp.f32 %v1892_v48  ;;  %v3600_v17 = vpop.eup %3599 }
 0x578   :  { %3603 = vrcp.f32 %v1893_v31  ;;  %v1894_v22 = vadd.f32 1.0, %v3600_v17 }
 0x57a   :  { %3605 = vrcp.f32 %v1894_v22 }
 0x581   :  { %v3602_v25 = vpop.eup %3601 }
 0x582   :  { %v1903_v30 = vmul.f32 %v3602_v25, %v3598_v1  ;;  %v3604_v51 = vpop.eup %3603 }
 0x583   :  { %v1902_v18 = vmul.f32 %v3604_v51, %v4324_v47  ;;  %v4527_v47 = vld [vmem:[#allocation24_spill] sm:$0xff] }
 0x584   :  { %v3606_v28 = vpop.eup %3605 }
 0x585   :  { %v4370_v27 = vadd.f32 %v1903_v30, %v1902_v18 }
 0x587   :  { %3607 = vtanh.f32 %v4370_v27 }
 0x591   :  { %v3608_v19 = vpop.eup %3607 }
 0x592   :  { %v4373_v29 = vmul.f32 %v3608_v19, %v3606_v28 }
 0x594   :  { %v1914_v39 = vpack.c.bf16 %v4373_v29, %v4373_v29 }
 0x596   :  { %2140 = vmatmul.mubr.bf16.vlgmr.msra.gmra.mrb[32].mxu0 %v1914_v39  ;;  %2181 = vmatmul.mubr.bf16.vlgmr.msra.gmra.mrb[40].mxu1 %v1914_v39 }
 0x597   :  { %2418 = vmatpush1.bf16.msra.mxu0 %v4237_v7  ;;  %2459 = vmatpush1.bf16.msra.mxu1 %v4239_v33 }
 0x598   :  { %2419 = vmatprep.subr.bf16.mxu0 %v4245_v0  ;;  %2460 = vmatprep.subr.bf16.mxu1 %v4247_v2 }
 0x599   :  { %2449 = vmatprep.mubr.bf16.mxu0 %v4517_v13  ;;  %2490 = vmatprep.mubr.bf16.mxu1 %v4517_v13 }
 0x59b   :  { %2420 = vmatpush1.bf16.msra.mxu0 %v4249_v50  ;;  %2461 = vmatpush1.bf16.msra.mxu1 %v4251_v60 }
 0x59c   :  { %2421 = vmatprep.subr.bf16.mxu0 %v4257_v61  ;;  %2462 = vmatprep.subr.bf16.mxu1 %v4259_v54 }
 0x59f   :  { %2422 = vmatpush1.bf16.msra.mxu0 %v4261_v62  ;;  %2463 = vmatpush1.bf16.msra.mxu1 %v4263_v37 }
 0x5a0   :  { %2423 = vmatprep.subr.bf16.mxu0 %v4269_v52  ;;  %2464 = vmatprep.subr.bf16.mxu1 %v4271_v55 }
 0x5a3   :  { %2424 = vmatpush1.bf16.msra.mxu0 %v4273_v56  ;;  %2465 = vmatpush1.bf16.msra.mxu1 %v4275_v11 }
 0x5a4   :  { %2425 = vmatprep.subr.bf16.mxu0 %v4281_v57  ;;  %2466 = vmatprep.subr.bf16.mxu1 %v4283_v58 }
 0x5a7   :  { %2426 = vmatpush1.bf16.msra.mxu0 %v4285_v24  ;;  %2467 = vmatpush1.bf16.msra.mxu1 %v4287_v16 }
 0x5a8   :  { %2427 = vmatprep.subr.bf16.mxu0 %v4203_v8  ;;  %2468 = vmatprep.subr.bf16.mxu1 %v4295_v23 }
 0x5ab   :  { %2428 = vmatpush1.bf16.msra.mxu0 %v4201_v6  ;;  %2469 = vmatpush1.bf16.msra.mxu1 %v4293_v21 }
 0x5ac   :  { %2429 = vmatprep.subr.bf16.mxu0 %v4205_v9  ;;  %2470 = vmatprep.subr.bf16.mxu1 %v4298_v34 }
 0x5af   :  { %2430 = vmatpush1.bf16.msra.mxu0 %v4209_v12  ;;  %2471 = vmatpush1.bf16.msra.mxu1 %v4303_v35 }
 0x5b0   :  { %2431 = vmatprep.subr.bf16.mxu0 %v4212_v14  ;;  %2472 = vmatprep.subr.bf16.mxu1 %v4307_v36 }
 0x5b3   :  { %2432 = vmatpush1.bf16.msra.mxu0 %v4215_v15  ;;  %2473 = vmatpush1.bf16.msra.mxu1 %v4311_v38 }
 0x5b4   :  { %2727 = vmatprep.subr.bf16.mxu0 %v4233_v5  ;;  %2768 = vmatprep.subr.bf16.mxu1 %v4235_v26 }
 0x669   :  { %v2141_v6 = vpop.f32.mrb[32].mxu0  ;;  %v2182_v8 = vpop.f32.mrb[40].mxu1 }
 0x66a   :  { %v2189_v9 = vadd.f32 %v2141_v6, %v4106_v53  ;;  %v2191_v12 = vadd.f32 %v2182_v8, %v4527_v47  ;;  %v2143_v40 = vpop.f32.mrb[33].mxu0  ;;  %v2184_v41 = vpop.f32.mrb[41].mxu1 }
 0x66b   :  { %v2190_v14 = vadd.f32 %v2143_v40, %v4108_v3  ;;  %v2192_v45 = vadd.f32 %v2184_v41, %v4528_v43  ;;  %v2145_v42 = vpop.f32.mrb[34].mxu0  ;;  %v2186_v15 = vpop.f32.mrb[42].mxu1 }
 0x66c   :  { %v3267_v46 = vmul.f32 -1.442695, %v2189_v9  ;;  %v2146_v44 = vpop.f32.mrb[35].mxu0  ;;  %v2187_v48 = vpop.f32.mrb[43].mxu1  ;;  %v3269_v26 = vmul.f32 -1.442695, %v2191_v12 }
 0x66d   :  { %v3268_v5 = vmul.f32 -1.442695, %v2190_v14  ;;  %v3522_v48 = vld [vmem:[#allocation12 + $0x8] sm:$0xff]  }
 0x66e   :  { %3609 = vpow2.f32 %v3267_v46 }
 0x66f   :  { %3611 = vpow2.f32 %v3268_v5  ;;  %v3357_v5 = vpack.c.bf16 %v4171_v63, %v4125_v59  ;;  %v3528_v59 = vld [vmem:[#allocation12 + $0x38] sm:$0xff]   ;;  %v3358_v63 = vpack.c.bf16 %v4327_v49, %v4227_v32 }
 0x670   :  { %3613 = vtanh.f32 %v2192_v45 }
 0x671   :  { %3615 = vpow2.f32 %v3269_v26  ;;  %v3523_v26 = vld [vmem:[#allocation12 + $0x10] sm:$0xff]  }
 0x678   :  { %v3610_v4 = vpop.eup %3609 }
 0x679   :  { %v2202_v31 = vadd.f32 1.0, %v3610_v4  ;;  %v3612_v53 = vpop.eup %3611  ;;  %v3524_v4 = vld [vmem:[#allocation12 + $0x18] sm:$0xff]  }
 0x67a   :  { %v2203_v1 = vadd.f32 1.0, %v3612_v53  ;;  %v3614_v3 = vpop.eup %3613  ;;  %v3526_v53 = vld [vmem:[#allocation12 + $0x28] sm:$0xff]  }
 0x67b   :  { %3617 = vrcp.f32 %v2202_v31  ;;  %v3616_v17 = vpop.eup %3615  ;;  %v3525_v31 = vld [vmem:[#allocation12 + $0x20] sm:$0xff]  }
 0x67c   :  { %3619 = vrcp.f32 %v2203_v1  ;;  %v2204_v22 = vadd.f32 1.0, %v3616_v17  ;;  %v3527_v1 = vld [vmem:[#allocation12 + $0x30] sm:$0xff]  }
 0x67e   :  { %3621 = vrcp.f32 %v2204_v22  ;;  %v4532_v22 = vld [vmem:[#allocation30_spill] sm:$0xff] }
 0x685   :  { %v3618_v25 = vpop.eup %3617 }
 0x686   :  { %v2213_v30 = vmul.f32 %v3618_v25, %v3614_v3  ;;  %v3620_v51 = vpop.eup %3619 }
 0x687   :  { %v2212_v18 = vmul.f32 %v3620_v51, %v4370_v27 }
 0x688   :  { %v3622_v19 = vpop.eup %3621 }
 0x689   :  { %v4416_v28 = vadd.f32 %v2213_v30, %v2212_v18  ;;  %v4531_v30 = vld [vmem:[#allocation34_spill] sm:$0xff] }
 0x68b   :  { %3623 = vtanh.f32 %v4416_v28 }
 0x695   :  { %v3624_v39 = vpop.eup %3623 }
 0x696   :  { %v4419_v6 = vmul.f32 %v3624_v39, %v3622_v19  ;;  %v4533_v39 = vld [vmem:[#allocation35_spill] sm:$0xff] }
 0x698   :  { %v2224_v8 = vpack.c.bf16 %v4419_v6, %v4419_v6  ;;  %v3359_v3 = vpack.c.bf16 %v4419_v6, %v4373_v29 }
 0x69a   :  { %2450 = vmatmul.mubr.bf16.vlgmr.msra.gmra.mrb[36].mxu0 %v2224_v8  ;;  %2491 = vmatmul.mubr.bf16.vlgmr.msra.gmra.mrb[44].mxu1 %v2224_v8 }
 0x69b   :  { %2728 = vmatpush1.bf16.msra.mxu0 %v4237_v7  ;;  %2769 = vmatpush1.bf16.msra.mxu1 %v4239_v33  ;;  %v3514_v7 = vld [vmem:[#allocation11 + $0xa4] ss:$16 sps:$4 sm:$0xff]  }
 0x69c   :  { %2729 = vmatprep.subr.bf16.mxu0 %v4245_v0  ;;  %2770 = vmatprep.subr.bf16.mxu1 %v4247_v2  ;;  %v3517_v33 = vld [vmem:[#allocation11 + $0xc4] ss:$16 sps:$4 sm:$0xff]   ;;  %v3515_v0 = vld [vmem:[#allocation11 + $0xc0] ss:$16 sps:$4 sm:$0xff]  }
 0x69d   :  { %2759 = vmatprep.mubr.bf16.mxu0 %v4517_v13  ;;  %2800 = vmatprep.mubr.bf16.mxu1 %v4517_v13  ;;  %v3512_v13 = vld [vmem:[#allocation11 + $0xa0] ss:$16 sps:$4 sm:$0xff]   ;;  %v3520_v2 = vld [vmem:[#allocation11 + $0xe4] ss:$16 sps:$4 sm:$0xff]  }
 0x69f   :  { %2730 = vmatpush1.bf16.msra.mxu0 %v4249_v50  ;;  %2771 = vmatpush1.bf16.msra.mxu1 %v4251_v60  ;;  %v3518_v50 = vld [vmem:[#allocation11 + $0xe0] ss:$16 sps:$4 sm:$0xff]  }
 0x6a0   :  { %2731 = vmatprep.subr.bf16.mxu0 %v4257_v61  ;;  %2772 = vmatprep.subr.bf16.mxu1 %v4259_v54  ;;  %v3521_v60 = vld [vmem:[#allocation12] sm:$0xff]  }
 0x6a3   :  { %2732 = vmatpush1.bf16.msra.mxu0 %v4261_v62  ;;  %2773 = vmatpush1.bf16.msra.mxu1 %v4263_v37  ;;  %v4529_v37 = vld [vmem:[#allocation26_spill] sm:$0xff] }
 0x6a4   :  { %2733 = vmatprep.subr.bf16.mxu0 %v4269_v52  ;;  %2774 = vmatprep.subr.bf16.mxu1 %v4271_v55 }
 0x6a7   :  { %2734 = vmatpush1.bf16.msra.mxu0 %v4273_v56  ;;  %2775 = vmatpush1.bf16.msra.mxu1 %v4275_v11 }
 0x6a8   :  { %2735 = vmatprep.subr.bf16.mxu0 %v4281_v57  ;;  %2776 = vmatprep.subr.bf16.mxu1 %v4283_v58  ;;  %v4530_v57 = vld [vmem:[#allocation28_spill] sm:$0xff] }
 0x6ab   :  { %2736 = vmatpush1.bf16.msra.mxu0 %v4285_v24  ;;  %2777 = vmatpush1.bf16.msra.mxu1 %v4287_v16 }
 0x6ac   :  { %2778 = vmatprep.subr.bf16.mxu1 %v4295_v23  ;;  %2737 = vmatprep.subr.bf16.mxu0 %v3514_v7 }
 0x6af   :  { %2779 = vmatpush1.bf16.msra.mxu1 %v4293_v21  ;;  %2738 = vmatpush1.bf16.msra.mxu0 %v3512_v13  ;;  %v4534_v13 = vld [vmem:[#allocation31_spill] sm:$0xff] }
 0x6b0   :  { %2780 = vmatprep.subr.bf16.mxu1 %v4298_v34  ;;  %2739 = vmatprep.subr.bf16.mxu0 %v3517_v33 }
 0x6b3   :  { %2781 = vmatpush1.bf16.msra.mxu1 %v4303_v35  ;;  %2740 = vmatpush1.bf16.msra.mxu0 %v3515_v0 }
 0x6b4   :  { %2782 = vmatprep.subr.bf16.mxu1 %v4307_v36  ;;  %2741 = vmatprep.subr.bf16.mxu0 %v3520_v2 }
 0x6b7   :  { %2783 = vmatpush1.bf16.msra.mxu1 %v4311_v38  ;;  %2742 = vmatpush1.bf16.msra.mxu0 %v3518_v50 }
 0x6b8   :  { %3373 = vmatprep.subr.bf16.mxu0 %v3521_v60 }
 0x76d   :  { %v2451_v61 = vpop.f32.mrb[36].mxu0  ;;  %v2492_v54 = vpop.f32.mrb[44].mxu1 }
 0x76e   :  { %v2499_v62 = vadd.f32 %v2451_v61, %v4110_v20  ;;  %v2501_v52 = vadd.f32 %v2492_v54, %v4529_v37  ;;  %v2453_v55 = vpop.f32.mrb[37].mxu0  ;;  %v2494_v56 = vpop.f32.mrb[45].mxu1 }
 0x76f   :  { %v2500_v11 = vadd.f32 %v2453_v55, %v4112_v10  ;;  %v2502_v58 = vadd.f32 %v2494_v56, %v4530_v57  ;;  %v2455_v24 = vpop.f32.mrb[38].mxu0  ;;  %v2496_v16 = vpop.f32.mrb[46].mxu1  ;;  %v3340_v57 = vld [vmem:[%s4496_s5] ss:$0 sm:$0xff]  ;;  %s3787_s5 = smov [#allocation14]  }
 0x770   :  { %v3302_v21 = vmul.f32 -1.442695, %v2499_v62  ;;  %v2456_v23 = vpop.f32.mrb[39].mxu0  ;;  %v2497_v34 = vpop.f32.mrb[47].mxu1  ;;  %v3304_v36 = vmul.f32 -1.442695, %v2501_v52 }
 0x771   :  { %v3303_v35 = vmul.f32 -1.442695, %v2500_v11  ;;  %s3030_s27 = sshll.u32 %s3787_s5, 4  ;;  %s3031_s27 = int_to_ptr.vmem [resolvable:$true] %s3030_s27 }
 0x772   :  { %3625 = vpow2.f32 %v3302_v21  ;;  %s3745_s28 = scalar_lea.vmem %s3031_s27, 1024  ;;  %p3750_p5 = scmp.lt.s32.totalorder %s3031_s27, %s3031_s27 }
 0x773   :  { %3627 = vpow2.f32 %v3303_v35  ;;  %p3746_p4 = scmp.ne.s32.totalorder %s3031_s27, %s3745_s28  ;;  %p3751_p6 = scmp.lt.s32.totalorder %s3745_s28, %s3745_s28 }
 0x774   :  { %3629 = vtanh.f32 %v2502_v58 }
 0x775   :  { %3631 = vpow2.f32 %v3304_v36  ;;  %p3752_p7 = por %p3751_p6, %p3750_p5 }
 0x777   :  { %p3753_p8 = pnand %p3752_p7, %p3746_p4 }
 0x77c   :  { %v3626_v38 = vpop.eup %3625 }
 0x77d   :  { %v2512_v27 = vadd.f32 1.0, %v3626_v38  ;;  %v3628_v20 = vpop.eup %3627 }
 0x77e   :  { %v2513_v9 = vadd.f32 1.0, %v3628_v20  ;;  %v3630_v10 = vpop.eup %3629 }
 0x77f   :  { %3633 = vrcp.f32 %v2512_v27  ;;  %v3632_v47 = vpop.eup %3631 }
 0x780   :  { %3635 = vrcp.f32 %v2513_v9  ;;  %v2514_v14 = vadd.f32 1.0, %v3632_v47 }
 0x782   :  { %3637 = vrcp.f32 %v2514_v14 }
 0x789   :  { %v3634_v12 = vpop.eup %3633 }
 0x78a   :  { %v2523_v40 = vmul.f32 %v3634_v12, %v3630_v10  ;;  %v3636_v41 = vpop.eup %3635 }
 0x78b   :  { %v2522_v43 = vmul.f32 %v3636_v41, %v4416_v28 }
 0x78c   :  { %v3638_v42 = vpop.eup %3637 }
 0x78d   :  { %v4454_v45 = vadd.f32 %v2523_v40, %v2522_v43 }
 0x78f   :  { %3639 = vtanh.f32 %v4454_v45 }
 0x799   :  { %v3640_v15 = vpop.eup %3639 }
 0x79a   :  { %v4457_v46 = vmul.f32 %v3640_v15, %v3638_v42 }
 0x79c   :  { %v2534_v44 = vpack.c.bf16 %v4457_v46, %v4457_v46 }
 0x79e   :  { %2760 = vmatmul.mubr.bf16.vlgmr.msra.gmra.mrb[40].mxu0 %v2534_v44  ;;  %2801 = vmatmul.mubr.bf16.vlgmr.msra.gmra.mrb[48].mxu1 %v2534_v44 }
 0x79f   :  { %3374 = vmatpush3.bf16.msra.mxu0 %v3521_v60  ;;  %3389 = vmatprep.mubr.bf16.mxu0 %v3357_v5 }
 0x7a0   :  { %3375 = vmatprep.subr.bf16.mxu0 %v3522_v48 }
 0x7a3   :  { %3376 = vmatpush3.bf16.msra.mxu0 %v3522_v48 }
 0x7a4   :  { %3377 = vmatprep.subr.bf16.mxu0 %v3523_v26 }
 0x7a7   :  { %3378 = vmatpush3.bf16.msra.mxu0 %v3523_v26 }
 0x7a8   :  { %3379 = vmatprep.subr.bf16.mxu0 %v3524_v4 }
 0x7ab   :  { %3380 = vmatpush3.bf16.msra.mxu0 %v3524_v4 }
 0x7ac   :  { %3381 = vmatprep.subr.bf16.mxu0 %v3525_v31 }
 0x7af   :  { %3382 = vmatpush3.bf16.msra.mxu0 %v3525_v31 }
 0x7b0   :  { %3383 = vmatprep.subr.bf16.mxu0 %v3526_v53 }
 0x7b3   :  { %3384 = vmatpush3.bf16.msra.mxu0 %v3526_v53 }
 0x7b4   :  { %3385 = vmatprep.subr.bf16.mxu0 %v3527_v1 }
 0x7b7   :  { %3386 = vmatpush3.bf16.msra.mxu0 %v3527_v1 }
 0x7b8   :  { %3387 = vmatprep.subr.bf16.mxu0 %v3528_v59 }
 0x7bb   :  { %3388 = vmatpush3.bf16.msra.mxu0 %v3528_v59 }
 0x7be   :  { %3390 = vmatmul.mubr.bf16.vlgmr.msra.gmra.mrb[44].mxu0 %v3358_v63 }
 0x7bf   :  { %3393 = vmatprep.mubr.bf16.mxu0 %v3359_v3 }
 0x871   :  { %v2761_v17 = vpop.f32.mrb[40].mxu0  ;;  %v2802_v25 = vpop.f32.mrb[48].mxu1 }
 0x872   :  { %v2809_v51 = vadd.f32 %v2761_v17, %v4531_v30  ;;  %v2811_v18 = vadd.f32 %v2802_v25, %v4532_v22  ;;  %v2763_v28 = vpop.f32.mrb[41].mxu0  ;;  %v2804_v19 = vpop.f32.mrb[49].mxu1 }
 0x873   :  { %v2810_v8 = vadd.f32 %v2763_v28, %v4533_v39  ;;  %v2812_v7 = vadd.f32 %v2804_v19, %v4534_v13  ;;  %v2765_v33 = vpop.f32.mrb[42].mxu0  ;;  %v2806_v0 = vpop.f32.mrb[50].mxu1 }
 0x874   :  { %v3337_v32 = vmul.f32 -1.442695, %v2809_v51  ;;  %v2766_v49 = vpop.f32.mrb[43].mxu0  ;;  %v2807_v2 = vpop.f32.mrb[51].mxu1  ;;  %v3339_v6 = vmul.f32 -1.442695, %v2811_v18 }
 0x875   :  { %v3338_v29 = vmul.f32 -1.442695, %v2810_v8 }
 0x876   :  { %3641 = vpow2.f32 %v3337_v32 }
 0x877   :  { %3643 = vpow2.f32 %v3338_v29 }
 0x878   :  { %3645 = vtanh.f32 %v2812_v7 }
 0x879   :  { %3647 = vpow2.f32 %v3339_v6 }
 0x880   :  { %v3642_v50 = vpop.eup %3641 }
 0x881   :  { %v2822_v60 = vadd.f32 1.0, %v3642_v50  ;;  %v3644_v61 = vpop.eup %3643 }
 0x882   :  { %v2823_v54 = vadd.f32 1.0, %v3644_v61  ;;  %v3646_v62 = vpop.eup %3645 }
 0x883   :  { %3649 = vrcp.f32 %v2822_v60  ;;  %v3648_v37 = vpop.eup %3647 }
 0x884   :  { %3651 = vrcp.f32 %v2823_v54  ;;  %v2824_v11 = vadd.f32 1.0, %v3648_v37 }
 0x886   :  { %3653 = vrcp.f32 %v2824_v11 }
 0x88d   :  { %v3650_v52 = vpop.eup %3649 }
 0x88e   :  { %v2833_v55 = vmul.f32 %v3650_v52, %v3646_v62  ;;  %v3652_v56 = vpop.eup %3651 }
 0x88f   :  { %v2832_v58 = vmul.f32 %v3652_v56, %v4454_v45 }
 0x890   :  { %v3654_v20 = vpop.eup %3653 }
 0x891   :  { %v3391_v24 = vpop.f32.mrb[44].mxu0  ;;  %v2834_v16 = vadd.f32 %v2833_v55, %v2832_v58 }
 0x892   :  { %v2995_v21 = vadd.f32 %v3391_v24, %v3340_v57  ;;  %v2986_v23 = vpop.f32.mrb[45].mxu0 }
 0x893   :  { %v2987_v34 = vadd.f32 %v3340_v57, %v2986_v23  ;;  %v3392_v35 = vpop.f32.mrb[46].mxu0  ;;  %3655 = vtanh.f32 %v2834_v16 }
 0x894   :  { %3019 = vst [vmem:[#allocation14 + $0x10] sm:$0xff] %v2995_v21  ;;  %v2998_v36 = vadd.f32 %v3392_v35, %v3340_v57  ;;  %v2989_v38 = vpop.f32.mrb[47].mxu0 }
 0x895   :  { %3017 = vst [vmem:[#allocation14] sm:$0xff] %v2987_v34  ;;  %v2990_v27 = vadd.f32 %v3340_v57, %v2989_v38 }
 0x896   :  { %3020 = vst [vmem:[#allocation14 + $0x18] sm:$0xff] %v2998_v36 }
 0x897   :  { %3018 = vst [vmem:[#allocation14 + $0x8] sm:$0xff] %v2990_v27 }
 0x89d   :  { %v3656_v9 = vpop.eup %3655 }
 0x89e   :  { %v2836_v10 = vmul.f32 %v3656_v9, %v3654_v20 }
 0x8a0   :  { %v3360_v47 = vpack.c.bf16 %v2836_v10, %v4457_v46 }
 0x8a2   :  { %3394 = vmatmul.mubr.bf16.gmra.mrb[48].mxu0 %v3360_v47 }
 0x975   :  { %v3395_v12 = vpop.f32.mrb[48].mxu0 }
 0x976   :  { %v3011_v40 = vadd.f32 %v3395_v12, %v3340_v57  ;;  %v3002_v41 = vpop.f32.mrb[49].mxu0 }
 0x977   :  { %v3003_v14 = vadd.f32 %v3340_v57, %v3002_v41  ;;  %v3396_v43 = vpop.f32.mrb[50].mxu0 }
 0x978   :  { %3023 = vst [vmem:[#allocation14 + $0x30] sm:$0xff] %v3011_v40  ;;  %v3014_v45 = vadd.f32 %v3396_v43, %v3340_v57  ;;  %v3005_v42 = vpop.f32.mrb[51].mxu0 }
 0x979   :  { %3021 = vst [vmem:[#allocation14 + $0x20] sm:$0xff] %v3003_v14  ;;  %v3006_v15 = vadd.f32 %v3340_v57, %v3005_v42 }
 0x97a   :  { %3024 = vst [vmem:[#allocation14 + $0x38] sm:$0xff] %v3014_v45 }
 0x97b   :  { %3022 = vst [vmem:[#allocation14 + $0x28] sm:$0xff] %v3006_v15 }
 0x97c   :  { %3756 = shalt.err (!%p3753_p8)
}
 0x97d   :  { %s3757_s9 = scalar_lea.hbm %s4497_s6, 1024 }
 0x97e   :  { %p3758_p9 = scmp.ne.s32.totalorder %s4497_s6, %s3757_s9  ;;  %p3761_p10 = scmp.lt.u32.totalorder %s3757_s9, %s4497_s6 }
 0x980   :  { %p3763_p11 = pnand %p3761_p10, %p3758_p9 }
 0x982   :  { %3766 = shalt.err (!%p3763_p11)
}
 0x983   :  { %3036 = dma.vmem_to_hbm [thread:$0]  %s3031_s27, 1024, %s4497_s6, [#allocation8], %s3779_s1, %s3779_s1, %s3780_s21  }
 0x984   :  { %3773 = dma.done.wait [#allocation8], 1024  }
 0x985   :  { %3774 = vsyncadd [#allocation8], 4294966272 }
 0x986   :  { %3040 = vsyncpa [#allocation7], 1 }
 0x987   :  { %3041 = vsyncpa [#allocation10], 1 }
 0x988   :  { %3042 = vsyncpa [#allocation13], 1 }
 0x989   :  { %3043 = vsyncpa [#allocation8], 1 }

</bundles_post_ra>
